<compile_context>
chip_gen: v7x
topology: tpu7x:2x2x1
jax: 0.10.0
libtpu: 0.0.40
codegen_flags: <defaults>
</compile_context>

<pallas_src>
import functools

import jax
import jax.numpy as jnp
from jax import lax
from jax.experimental import pallas as pl
from jax.experimental.pallas import tpu as pltpu

EPS = 1e-5


# ---------------------------------------------------------------------------
# Kernel: B images per grid step, everything fused.
# ---------------------------------------------------------------------------
def _basic_block_kernel(xp_ref, xres_ref, mask_ref, w1_ref, s1_ref, b1_ref,
                        w2_ref, s2_ref, b2_ref, out_ref, *, block_b, height):
    # xp_ref  : (B*HP, WC) bf16  B images stacked along rows, H padded by 2
    # xres_ref: (B*H,  WC) f32   residual (unpadded), stacked along rows
    # mask_ref: (B*HP, 1)  f32   0.0 on each image's 2 ring rows, else 1.0
    # w1_ref  : (3, WC, WC) bf16 banded conv1 weights, one per kh tap
    # s1/b1   : (1, WC) f32      folded BN1 scale/bias (tiled per column)
    # w2_ref  : (3, WC, WC) bf16 banded conv2 weights
    # s2/b2   : (1, WC) f32      folded BN2 scale/bias
    # out_ref : (B*H, WC) f32    lane-dense output
    B, H = block_b, height
    HP = H + 4                      # per-image row stride (2-row pad each side)
    R = B * HP                      # rows in the stacked input slab
    RE = R - 2                      # rows of the extended conv1 grid
    RT = R - 4                      # rows covering every valid conv2 output

    xp = xp_ref[...]                # (R, WC) bf16, loaded once

    # ---- conv1: per-tap full-slab matmuls (K = N = WC), combined by shifting
    # the f32 results; the packed bf16 operand is never sliced.
    q0 = jnp.dot(xp, w1_ref[0], preferred_element_type=jnp.float32)
    q1 = jnp.dot(xp, w1_ref[1], preferred_element_type=jnp.float32)
    q2 = jnp.dot(xp, w1_ref[2], preferred_element_type=jnp.float32)
    acc1 = q0[0:RE] + q1[1:RE + 1] + q2[2:RE + 2]            # (RE, WC) f32

    # ---- BN1 (folded) + ReLU; zero each image's ring rows (= conv2's SAME
    # zero padding along H); single bf16 cast for the conv2 operand.
    mid = jnp.maximum(acc1 * s1_ref[...] + b1_ref[...], 0.0)
    mid = (mid * mask_ref[0:RE, :]).astype(jnp.bfloat16)     # (RE, WC) bf16

    # ---- conv2: same banded 3-tap structure.
    p0 = jnp.dot(mid, w2_ref[0], preferred_element_type=jnp.float32)
    p1 = jnp.dot(mid, w2_ref[1], preferred_element_type=jnp.float32)
    p2 = jnp.dot(mid, w2_ref[2], preferred_element_type=jnp.float32)
    acc2 = p0[0:RT] + p1[1:RT + 1] + p2[2:RT + 2]            # (RT, WC) f32

    # ---- BN2 (folded) + residual + ReLU.  Each image's H valid rows sit at a
    # stride of HP inside acc2; extract them and store full-lane (WC) blocks.
    s2 = s2_ref[...]
    b2 = b2_ref[...]
    for i in range(B):
        blk = acc2[i * HP:i * HP + H]                        # (H, WC) f32
        res = xres_ref[i * H:(i + 1) * H, :]
        out = jnp.maximum(blk * s2 + b2 + res, 0.0)
        out_ref[i * H:(i + 1) * H, :] = out.astype(out_ref.dtype)


# ---------------------------------------------------------------------------
# Host-side helpers
# ---------------------------------------------------------------------------
def _fold_bn(gamma, beta, mean, var):
    scale = gamma / jnp.sqrt(var + EPS)
    return scale, beta - mean * scale


def _banded_weights(w_hwio, width, dtype):
    """Per-kh banded matrices B_kh of shape (W*C, W*C) with the SAME padding
    along W absorbed (edge taps clipped):
      B_kh[wi*C + ci, w*C + co] = w[kh, wi - w + 1, ci, co]  if |wi - w| <= 1.
    """
    C = w_hwio.shape[2]
    wi = jnp.arange(width)[:, None]
    wo = jnp.arange(width)[None, :]
    kw = wi - wo + 1
    valid = (kw >= 0) & (kw <= 2)
    blocks = w_hwio[:, jnp.clip(kw, 0, 2)]                   # (3, W, W, C, C)
    blocks = jnp.where(valid[None, :, :, None, None], blocks, 0.0)
    banded = blocks.transpose(0, 1, 3, 2, 4).reshape(3, width * C, width * C)
    return banded.astype(dtype)


def _pick_block_batch(n, h):
    """Images per grid step: aim for ~256 MXU rows per step, keep >=2 grid
    steps when possible (v7x has 2 TensorCores), and keep block sublane
    extents multiples of 8."""
    hp = h + 4
    cap = max(1, 256 // hp)
    if n >= 2:
        cap = min(cap, max(1, n // 2))
    for b in range(min(cap, n), 0, -1):
        if n % b == 0 and (b * hp) % 8 == 0 and (b * h) % 8 == 0:
            return b
    return n        # single step: block shape == full array shape is allowed


def basic_block_forward_rows(x_rows, params, *, n, h, w, c, images_per_step=None):
    """BasicBlock forward on activations already in the lane-dense rows layout
    (n*h, w*c) float32.  Chain several blocks at this level and convert
    NCHW <-> rows once at model entry/exit to avoid per-block transposes."""
    wc = w * c
    hp = h + 4
    b = images_per_step if images_per_step is not None else _pick_block_batch(n, h)
    assert n % b == 0, "batch must be divisible by images_per_step"
    steps = n // b

    # Pad H only (the width padding is absorbed into the banded weights) and
    # cast the matmul operand to bf16 once, host-side.
    xp_rows = jnp.pad(x_rows.reshape(n, h, wc), ((0, 0), (2, 2), (0, 0)))
    xp_rows = xp_rows.reshape(n * hp, wc).astype(jnp.bfloat16)

    # Ring mask: per image, extended rows 0 and h+1 are conv2's zero padding.
    rr = jnp.arange(b * hp, dtype=jnp.int32) % hp
    mask = jnp.where((rr == 0) | (rr == h + 1), 0.0, 1.0)
    mask = mask.astype(jnp.float32).reshape(b * hp, 1)

    s1, b1 = _fold_bn(params["bn1_gamma"], params["bn1_beta"],
                      params["bn1_mean"], params["bn1_var"])
    s2, b2 = _fold_bn(params["bn2_gamma"], params["bn2_beta"],
                      params["bn2_mean"], params["bn2_var"])
    s1r = jnp.tile(s1, w).reshape(1, wc)
    b1r = jnp.tile(b1, w).reshape(1, wc)
    s2r = jnp.tile(s2, w).reshape(1, wc)
    b2r = jnp.tile(b2, w).reshape(1, wc)

    w1b = _banded_weights(params["w1"], w, jnp.bfloat16)
    w2b = _banded_weights(params["w2"], w, jnp.bfloat16)

    # Advisory cost: actual MXU work of the banded formulation.
    r = b * hp
    flops = steps * 2 * 3 * wc * wc * (r + (r - 2))
    bytes_accessed = (xp_rows.size * 2 + x_rows.size * 4 + mask.size * 4
                      + (w1b.size + w2b.size) * 2
                      + (s1r.size + b1r.size + s2r.size + b2r.size) * 4
                      + n * h * wc * 4)

    kernel = functools.partial(_basic_block_kernel, block_b=b, height=h)
    out_rows = pl.pallas_call(
        kernel,
        out_shape=jax.ShapeDtypeStruct((n * h, wc), jnp.float32),
        grid_spec=pltpu.PrefetchScalarGridSpec(
            num_scalar_prefetch=0,
            grid=(steps,),
            in_specs=[
                pl.BlockSpec((b * hp, wc), lambda g: (g, 0)),    # activations
                pl.BlockSpec((b * h, wc), lambda g: (g, 0)),     # residual
                pl.BlockSpec((b * hp, 1), lambda g: (0, 0)),     # ring mask
                pl.BlockSpec((3, wc, wc), lambda g: (0, 0, 0)),  # conv1 weights
                pl.BlockSpec((1, wc), lambda g: (0, 0)),         # bn1 scale
                pl.BlockSpec((1, wc), lambda g: (0, 0)),         # bn1 bias
                pl.BlockSpec((3, wc, wc), lambda g: (0, 0, 0)),  # conv2 weights
                pl.BlockSpec((1, wc), lambda g: (0, 0)),         # bn2 scale
                pl.BlockSpec((1, wc), lambda g: (0, 0)),         # bn2 bias
            ],
            out_specs=pl.BlockSpec((b * h, wc), lambda g: (g, 0)),
        ),
        compiler_params=pltpu.CompilerParams(
            dimension_semantics=("parallel",),   # shard steps over TCs (v7x)
            # Per-step VMEM footprint is ~1.5 MiB at these shapes; 32 MiB
            # leaves ample pipelining headroom on every generation (well
            # under v7x's 64 MiB physical VMEM).
            vmem_limit_bytes=32 * 1024 * 1024,
        ),
        cost_estimate=pl.CostEstimate(flops=flops, transcendentals=0,
                                      bytes_accessed=bytes_accessed),
    )(xp_rows, x_rows, mask, w1b, s1r, b1r, w2b, s2r, b2r)
    return out_rows


def basic_block_forward(x_nchw, params, images_per_step=None):
    """BasicBlock forward, NCHW in / NCHW out (stride=1, downsample=None)."""
    n, c, h, w = x_nchw.shape
    x_rows = jnp.transpose(x_nchw, (0, 2, 3, 1)).reshape(n * h, w * c)
    out_rows = basic_block_forward_rows(x_rows, params, n=n, h=h, w=w, c=c,
                                        images_per_step=images_per_step)
    out = out_rows.reshape(n, h, w, c)
    return jnp.transpose(out, (0, 3, 1, 2))


# ---------------------------------------------------------------------------
# Pure-JAX reference (same bf16-operand / f32-accumulate precision policy)
# ---------------------------------------------------------------------------
def _reference_forward(x_nchw, params):
    x = jnp.transpose(x_nchw, (0, 2, 3, 1))
    dn = ("NHWC", "HWIO", "NHWC")

    def conv(inp, w):
        return lax.conv_general_dilated(
            inp.astype(jnp.bfloat16), w.astype(jnp.bfloat16), (1, 1), "SAME",
            dimension_numbers=dn, preferred_element_type=jnp.float32)

    def bn(o, g, b, m, v):
        s = g / jnp.sqrt(v + EPS)
        return o * s + (b - m * s)

    o = conv(x, params["w1"])
    o = jnp.maximum(bn(o, params["bn1_gamma"], params["bn1_beta"],
                       params["bn1_mean"], params["bn1_var"]), 0.0)
    o = conv(o, params["w2"])
    o = bn(o, params["bn2_gamma"], params["bn2_beta"],
           params["bn2_mean"], params["bn2_var"])
    o = jnp.maximum(o + x, 0.0)
    return jnp.transpose(o, (0, 3, 1, 2))


def init_params(key, planes):
    ks = jax.random.split(key, 10)
    fan_in = 3 * 3 * planes
    std = (2.0 / fan_in) ** 0.5
    return {
        "w1": std * jax.random.normal(ks[0], (3, 3, planes, planes), jnp.float32),
        "w2": std * jax.random.normal(ks[1], (3, 3, planes, planes), jnp.float32),
        "bn1_gamma": 1.0 + 0.1 * jax.random.normal(ks[2], (planes,), jnp.float32),
        "bn1_beta": 0.1 * jax.random.normal(ks[3], (planes,), jnp.float32),
        "bn1_mean": 0.1 * jax.random.normal(ks[4], (planes,), jnp.float32),
        "bn1_var": 0.5 + jax.random.uniform(ks[5], (planes,), jnp.float32),
        "bn2_gamma": 1.0 + 0.1 * jax.random.normal(ks[6], (planes,), jnp.float32),
        "bn2_beta": 0.1 * jax.random.normal(ks[7], (planes,), jnp.float32),
        "bn2_mean": 0.1 * jax.random.normal(ks[8], (planes,), jnp.float32),
        "bn2_var": 0.5 + jax.random.uniform(ks[9], (planes,), jnp.float32),
    }


if __name__ == "__main__":
    key = jax.random.PRNGKey(0)
    k_x, k_p = jax.random.split(key)

    # inplanes = planes = 8, stride = 1, downsample = None.
    # N=8 so the wrapper batches 4 images per grid step (M ~ 80 MXU rows)
    # while keeping 2 parallel grid steps for v7x's two TensorCores.
    N, C, H, W = 8, 8, 16, 16
    x = jax.random.normal(k_x, (N, C, H, W), jnp.float32)
    params = init_params(k_p, C)

    out = jax.block_until_ready(basic_block_forward(x, params))
    ref = jax.block_until_ready(_reference_forward(x, params))

    assert out.shape == (N, C, H, W)
    # bf16 MXU operands on both sides; tolerance covers bf16 rounding noise.
    assert jnp.allclose(out, ref, rtol=1e-2, atol=1e-2), \
        f"mismatch vs reference: max|diff|={float(jnp.max(jnp.abs(out - ref)))}"

    # TODO(synk): builder.activation may be a learned/masked activation in the
    # pruning repo; plain ReLU semantics (its un-masked forward) are implemented.
    print("KERNEL_OK")
</pallas_src>

<mosaic_0001>
module attributes {stable_mosaic.version = 11 : i64} {
  func.func @_basic_block_kernel(%arg0: i32, %arg1: memref<80x128xbf16, #tpu.memory_space<vmem>>, %arg2: memref<64x128xf32, #tpu.memory_space<vmem>>, %arg3: memref<80x1xf32, #tpu.memory_space<vmem>>, %arg4: memref<3x128x128xbf16, #tpu.memory_space<vmem>>, %arg5: memref<1x128xf32, #tpu.memory_space<vmem>>, %arg6: memref<1x128xf32, #tpu.memory_space<vmem>>, %arg7: memref<3x128x128xbf16, #tpu.memory_space<vmem>>, %arg8: memref<1x128xf32, #tpu.memory_space<vmem>>, %arg9: memref<1x128xf32, #tpu.memory_space<vmem>>, %arg10: memref<64x128xf32, #tpu.memory_space<vmem>>) attributes {dimension_semantics = [#tpu.dimension_semantics<parallel>], iteration_bounds = array<i64: 2>, scalar_prefetch = 0 : i64, scratch_operands = 0 : i64, tpu.core_type = #tpu.core_type<tc>, window_params = [{transform_indices = @transform_0, window_bounds = array<i64: 80, 128>}, {transform_indices = @transform_1, window_bounds = array<i64: 64, 128>}, {pipeline_mode = #tpu.pipeline_mode<synchronous>, transform_indices = @transform_2, window_bounds = array<i64: 80, 1>}, {pipeline_mode = #tpu.pipeline_mode<synchronous>, transform_indices = @transform_3, window_bounds = array<i64: 3, 128, 128>}, {pipeline_mode = #tpu.pipeline_mode<synchronous>, transform_indices = @transform_4, window_bounds = array<i64: 1, 128>}, {pipeline_mode = #tpu.pipeline_mode<synchronous>, transform_indices = @transform_5, window_bounds = array<i64: 1, 128>}, {pipeline_mode = #tpu.pipeline_mode<synchronous>, transform_indices = @transform_6, window_bounds = array<i64: 3, 128, 128>}, {pipeline_mode = #tpu.pipeline_mode<synchronous>, transform_indices = @transform_7, window_bounds = array<i64: 1, 128>}, {pipeline_mode = #tpu.pipeline_mode<synchronous>, transform_indices = @transform_8, window_bounds = array<i64: 1, 128>}, {transform_indices = @transform_9, window_bounds = array<i64: 64, 128>}]} {
    %c0 = arith.constant 0 : index
    %c0_0 = arith.constant 0 : index
    %0 = vector.load %arg1[%c0, %c0_0] : memref<80x128xbf16, #tpu.memory_space<vmem>>, vector<80x128xbf16>
    %c0_1 = arith.constant 0 : index
    %c0_2 = arith.constant 0 : index
    %c0_3 = arith.constant 0 : index
    %1 = vector.load %arg4[%c0_1, %c0_2, %c0_3] : memref<3x128x128xbf16, #tpu.memory_space<vmem>>, vector<1x128x128xbf16>
    %2 = vector.shape_cast %1 : vector<1x128x128xbf16> to vector<128x128xbf16>
    %cst = arith.constant dense<0.000000e+00> : vector<80x128xf32>
    %3 = tpu.matmul %0, %2, %cst {dimension_numbers = #tpu.dot_dimension_numbers<[1], [0], [0], [1], [0, 0, 1, 1], [], []>} : vector<80x128xbf16>, vector<128x128xbf16>, vector<80x128xf32> -> vector<80x128xf32>
    %c1 = arith.constant 1 : index
    %c0_4 = arith.constant 0 : index
    %c0_5 = arith.constant 0 : index
    %4 = vector.load %arg4[%c1, %c0_4, %c0_5] : memref<3x128x128xbf16, #tpu.memory_space<vmem>>, vector<1x128x128xbf16>
    %5 = vector.shape_cast %4 : vector<1x128x128xbf16> to vector<128x128xbf16>
    %cst_6 = arith.constant dense<0.000000e+00> : vector<80x128xf32>
    %6 = tpu.matmul %0, %5, %cst_6 {dimension_numbers = #tpu.dot_dimension_numbers<[1], [0], [0], [1], [0, 0, 1, 1], [], []>} : vector<80x128xbf16>, vector<128x128xbf16>, vector<80x128xf32> -> vector<80x128xf32>
    %c2 = arith.constant 2 : index
    %c0_7 = arith.constant 0 : index
    %c0_8 = arith.constant 0 : index
    %7 = vector.load %arg4[%c2, %c0_7, %c0_8] : memref<3x128x128xbf16, #tpu.memory_space<vmem>>, vector<1x128x128xbf16>
    %8 = vector.shape_cast %7 : vector<1x128x128xbf16> to vector<128x128xbf16>
    %cst_9 = arith.constant dense<0.000000e+00> : vector<80x128xf32>
    %9 = tpu.matmul %0, %8, %cst_9 {dimension_numbers = #tpu.dot_dimension_numbers<[1], [0], [0], [1], [0, 0, 1, 1], [], []>} : vector<80x128xbf16>, vector<128x128xbf16>, vector<80x128xf32> -> vector<80x128xf32>
    %10 = vector.extract_strided_slice %3 {offsets = [0, 0], sizes = [78, 128], strides = [1, 1]} : vector<80x128xf32> to vector<78x128xf32>
    %11 = vector.extract_strided_slice %6 {offsets = [1, 0], sizes = [78, 128], strides = [1, 1]} : vector<80x128xf32> to vector<78x128xf32>
    %12 = arith.addf %10, %11 : vector<78x128xf32>
    %13 = vector.extract_strided_slice %9 {offsets = [2, 0], sizes = [78, 128], strides = [1, 1]} : vector<80x128xf32> to vector<78x128xf32>
    %14 = arith.addf %12, %13 : vector<78x128xf32>
    %c0_10 = arith.constant 0 : index
    %c0_11 = arith.constant 0 : index
    %15 = vector.load %arg5[%c0_10, %c0_11] : memref<1x128xf32, #tpu.memory_space<vmem>>, vector<1x128xf32>
    %16 = vector.broadcast %15 : vector<1x128xf32> to vector<78x128xf32>
    %17 = arith.mulf %14, %16 : vector<78x128xf32>
    %c0_12 = arith.constant 0 : index
    %c0_13 = arith.constant 0 : index
    %18 = vector.load %arg6[%c0_12, %c0_13] : memref<1x128xf32, #tpu.memory_space<vmem>>, vector<1x128xf32>
    %19 = vector.broadcast %18 : vector<1x128xf32> to vector<78x128xf32>
    %20 = arith.addf %17, %19 : vector<78x128xf32>
    %cst_14 = arith.constant 0.000000e+00 : f32
    %21 = vector.broadcast %cst_14 : f32 to vector<78x128xf32>
    %22 = arith.maximumf %20, %21 : vector<78x128xf32>
    %c0_15 = arith.constant 0 : index
    %c0_16 = arith.constant 0 : index
    %23 = vector.load %arg3[%c0_15, %c0_16] : memref<80x1xf32, #tpu.memory_space<vmem>>, vector<78x1xf32>
    %24 = vector.broadcast %23 : vector<78x1xf32> to vector<78x128xf32>
    %25 = arith.mulf %22, %24 : vector<78x128xf32>
    %26 = arith.truncf %25 : vector<78x128xf32> to vector<78x128xbf16>
    %c0_17 = arith.constant 0 : index
    %c0_18 = arith.constant 0 : index
    %c0_19 = arith.constant 0 : index
    %27 = vector.load %arg7[%c0_17, %c0_18, %c0_19] : memref<3x128x128xbf16, #tpu.memory_space<vmem>>, vector<1x128x128xbf16>
    %28 = vector.shape_cast %27 : vector<1x128x128xbf16> to vector<128x128xbf16>
    %cst_20 = arith.constant dense<0.000000e+00> : vector<78x128xf32>
    %29 = tpu.matmul %26, %28, %cst_20 {dimension_numbers = #tpu.dot_dimension_numbers<[1], [0], [0], [1], [0, 0, 1, 1], [], []>} : vector<78x128xbf16>, vector<128x128xbf16>, vector<78x128xf32> -> vector<78x128xf32>
    %c1_21 = arith.constant 1 : index
    %c0_22 = arith.constant 0 : index
    %c0_23 = arith.constant 0 : index
    %30 = vector.load %arg7[%c1_21, %c0_22, %c0_23] : memref<3x128x128xbf16, #tpu.memory_space<vmem>>, vector<1x128x128xbf16>
    %31 = vector.shape_cast %30 : vector<1x128x128xbf16> to vector<128x128xbf16>
    %cst_24 = arith.constant dense<0.000000e+00> : vector<78x128xf32>
    %32 = tpu.matmul %26, %31, %cst_24 {dimension_numbers = #tpu.dot_dimension_numbers<[1], [0], [0], [1], [0, 0, 1, 1], [], []>} : vector<78x128xbf16>, vector<128x128xbf16>, vector<78x128xf32> -> vector<78x128xf32>
    %c2_25 = arith.constant 2 : index
    %c0_26 = arith.constant 0 : index
    %c0_27 = arith.constant 0 : index
    %33 = vector.load %arg7[%c2_25, %c0_26, %c0_27] : memref<3x128x128xbf16, #tpu.memory_space<vmem>>, vector<1x128x128xbf16>
    %34 = vector.shape_cast %33 : vector<1x128x128xbf16> to vector<128x128xbf16>
    %cst_28 = arith.constant dense<0.000000e+00> : vector<78x128xf32>
    %35 = tpu.matmul %26, %34, %cst_28 {dimension_numbers = #tpu.dot_dimension_numbers<[1], [0], [0], [1], [0, 0, 1, 1], [], []>} : vector<78x128xbf16>, vector<128x128xbf16>, vector<78x128xf32> -> vector<78x128xf32>
    %36 = vector.extract_strided_slice %29 {offsets = [0, 0], sizes = [76, 128], strides = [1, 1]} : vector<78x128xf32> to vector<76x128xf32>
    %37 = vector.extract_strided_slice %32 {offsets = [1, 0], sizes = [76, 128], strides = [1, 1]} : vector<78x128xf32> to vector<76x128xf32>
    %38 = arith.addf %36, %37 : vector<76x128xf32>
    %39 = vector.extract_strided_slice %35 {offsets = [2, 0], sizes = [76, 128], strides = [1, 1]} : vector<78x128xf32> to vector<76x128xf32>
    %40 = arith.addf %38, %39 : vector<76x128xf32>
    %c0_29 = arith.constant 0 : index
    %c0_30 = arith.constant 0 : index
    %41 = vector.load %arg8[%c0_29, %c0_30] : memref<1x128xf32, #tpu.memory_space<vmem>>, vector<1x128xf32>
    %c0_31 = arith.constant 0 : index
    %c0_32 = arith.constant 0 : index
    %42 = vector.load %arg9[%c0_31, %c0_32] : memref<1x128xf32, #tpu.memory_space<vmem>>, vector<1x128xf32>
    %43 = vector.extract_strided_slice %40 {offsets = [0, 0], sizes = [16, 128], strides = [1, 1]} : vector<76x128xf32> to vector<16x128xf32>
    %c0_33 = arith.constant 0 : index
    %c0_34 = arith.constant 0 : index
    %44 = vector.load %arg2[%c0_33, %c0_34] : memref<64x128xf32, #tpu.memory_space<vmem>>, vector<16x128xf32>
    %45 = vector.broadcast %41 : vector<1x128xf32> to vector<16x128xf32>
    %46 = arith.mulf %43, %45 : vector<16x128xf32>
    %47 = vector.broadcast %42 : vector<1x128xf32> to vector<16x128xf32>
    %48 = arith.addf %46, %47 : vector<16x128xf32>
    %49 = arith.addf %48, %44 : vector<16x128xf32>
    %cst_35 = arith.constant 0.000000e+00 : f32
    %50 = vector.broadcast %cst_35 : f32 to vector<16x128xf32>
    %51 = arith.maximumf %49, %50 : vector<16x128xf32>
    %c0_36 = arith.constant 0 : index
    %c0_37 = arith.constant 0 : index
    %52 = vector.load %arg10[%c0_36, %c0_37] : memref<64x128xf32, #tpu.memory_space<vmem>>, vector<16x128xf32>
    tpu.vector_store %arg10[%c0_36, %c0_37], %51 {strides = array<i32>} : memref<64x128xf32, #tpu.memory_space<vmem>>, vector<16x128xf32>,
    %53 = vector.extract_strided_slice %40 {offsets = [20, 0], sizes = [16, 128], strides = [1, 1]} : vector<76x128xf32> to vector<16x128xf32>
    %c16 = arith.constant 16 : index
    %c0_38 = arith.constant 0 : index
    %54 = vector.load %arg2[%c16, %c0_38] : memref<64x128xf32, #tpu.memory_space<vmem>>, vector<16x128xf32>
    %55 = vector.broadcast %41 : vector<1x128xf32> to vector<16x128xf32>
    %56 = arith.mulf %53, %55 : vector<16x128xf32>
    %57 = vector.broadcast %42 : vector<1x128xf32> to vector<16x128xf32>
    %58 = arith.addf %56, %57 : vector<16x128xf32>
    %59 = arith.addf %58, %54 : vector<16x128xf32>
    %cst_39 = arith.constant 0.000000e+00 : f32
    %60 = vector.broadcast %cst_39 : f32 to vector<16x128xf32>
    %61 = arith.maximumf %59, %60 : vector<16x128xf32>
    %c16_40 = arith.constant 16 : index
    %c0_41 = arith.constant 0 : index
    %62 = vector.load %arg10[%c16_40, %c0_41] : memref<64x128xf32, #tpu.memory_space<vmem>>, vector<16x128xf32>
    tpu.vector_store %arg10[%c16_40, %c0_41], %61 {strides = array<i32>} : memref<64x128xf32, #tpu.memory_space<vmem>>, vector<16x128xf32>,
    %63 = vector.extract_strided_slice %40 {offsets = [40, 0], sizes = [16, 128], strides = [1, 1]} : vector<76x128xf32> to vector<16x128xf32>
    %c32 = arith.constant 32 : index
    %c0_42 = arith.constant 0 : index
    %64 = vector.load %arg2[%c32, %c0_42] : memref<64x128xf32, #tpu.memory_space<vmem>>, vector<16x128xf32>
    %65 = vector.broadcast %41 : vector<1x128xf32> to vector<16x128xf32>
    %66 = arith.mulf %63, %65 : vector<16x128xf32>
    %67 = vector.broadcast %42 : vector<1x128xf32> to vector<16x128xf32>
    %68 = arith.addf %66, %67 : vector<16x128xf32>
    %69 = arith.addf %68, %64 : vector<16x128xf32>
    %cst_43 = arith.constant 0.000000e+00 : f32
    %70 = vector.broadcast %cst_43 : f32 to vector<16x128xf32>
    %71 = arith.maximumf %69, %70 : vector<16x128xf32>
    %c32_44 = arith.constant 32 : index
    %c0_45 = arith.constant 0 : index
    %72 = vector.load %arg10[%c32_44, %c0_45] : memref<64x128xf32, #tpu.memory_space<vmem>>, vector<16x128xf32>
    tpu.vector_store %arg10[%c32_44, %c0_45], %71 {strides = array<i32>} : memref<64x128xf32, #tpu.memory_space<vmem>>, vector<16x128xf32>,
    %73 = vector.extract_strided_slice %40 {offsets = [60, 0], sizes = [16, 128], strides = [1, 1]} : vector<76x128xf32> to vector<16x128xf32>
    %c48 = arith.constant 48 : index
    %c0_46 = arith.constant 0 : index
    %74 = vector.load %arg2[%c48, %c0_46] : memref<64x128xf32, #tpu.memory_space<vmem>>, vector<16x128xf32>
    %75 = vector.broadcast %41 : vector<1x128xf32> to vector<16x128xf32>
    %76 = arith.mulf %73, %75 : vector<16x128xf32>
    %77 = vector.broadcast %42 : vector<1x128xf32> to vector<16x128xf32>
    %78 = arith.addf %76, %77 : vector<16x128xf32>
    %79 = arith.addf %78, %74 : vector<16x128xf32>
    %cst_47 = arith.constant 0.000000e+00 : f32
    %80 = vector.broadcast %cst_47 : f32 to vector<16x128xf32>
    %81 = arith.maximumf %79, %80 : vector<16x128xf32>
    %c48_48 = arith.constant 48 : index
    %c0_49 = arith.constant 0 : index
    %82 = vector.load %arg10[%c48_48, %c0_49] : memref<64x128xf32, #tpu.memory_space<vmem>>, vector<16x128xf32>
    tpu.vector_store %arg10[%c48_48, %c0_49], %81 {strides = array<i32>} : memref<64x128xf32, #tpu.memory_space<vmem>>, vector<16x128xf32>,
    return
  }
  func.func @transform_0(%arg0: i32) -> (i32, i32) {
    %c0_i32 = arith.constant 0 : i32
    %c0_i32_0 = arith.constant 0 : i32
    return %arg0, %c0_i32 : i32, i32
  }
  func.func @transform_1(%arg0: i32) -> (i32, i32) {
    %c0_i32 = arith.constant 0 : i32
    %c0_i32_0 = arith.constant 0 : i32
    return %arg0, %c0_i32 : i32, i32
  }
  func.func @transform_2(%arg0: i32) -> (i32, i32) {
    %c0_i32 = arith.constant 0 : i32
    %c0_i32_0 = arith.constant 0 : i32
    %c0_i32_1 = arith.constant 0 : i32
    return %c0_i32, %c0_i32_0 : i32, i32
  }
  func.func @transform_3(%arg0: i32) -> (i32, i32, i32) {
    %c0_i32 = arith.constant 0 : i32
    %c0_i32_0 = arith.constant 0 : i32
    %c0_i32_1 = arith.constant 0 : i32
    %c0_i32_2 = arith.constant 0 : i32
    return %c0_i32, %c0_i32_0, %c0_i32_1 : i32, i32, i32
  }
  func.func @transform_4(%arg0: i32) -> (i32, i32) {
    %c0_i32 = arith.constant 0 : i32
    %c0_i32_0 = arith.constant 0 : i32
    %c0_i32_1 = arith.constant 0 : i32
    return %c0_i32, %c0_i32_0 : i32, i32
  }
  func.func @transform_5(%arg0: i32) -> (i32, i32) {
    %c0_i32 = arith.constant 0 : i32
    %c0_i32_0 = arith.constant 0 : i32
    %c0_i32_1 = arith.constant 0 : i32
    return %c0_i32, %c0_i32_0 : i32, i32
  }
  func.func @transform_6(%arg0: i32) -> (i32, i32, i32) {
    %c0_i32 = arith.constant 0 : i32
    %c0_i32_0 = arith.constant 0 : i32
    %c0_i32_1 = arith.constant 0 : i32
    %c0_i32_2 = arith.constant 0 : i32
    return %c0_i32, %c0_i32_0, %c0_i32_1 : i32, i32, i32
  }
  func.func @transform_7(%arg0: i32) -> (i32, i32) {
    %c0_i32 = arith.constant 0 : i32
    %c0_i32_0 = arith.constant 0 : i32
    %c0_i32_1 = arith.constant 0 : i32
    return %c0_i32, %c0_i32_0 : i32, i32
  }
  func.func @transform_8(%arg0: i32) -> (i32, i32) {
    %c0_i32 = arith.constant 0 : i32
    %c0_i32_0 = arith.constant 0 : i32
    %c0_i32_1 = arith.constant 0 : i32
    return %c0_i32, %c0_i32_0 : i32, i32
  }
  func.func @transform_9(%arg0: i32) -> (i32, i32) {
    %c0_i32 = arith.constant 0 : i32
    %c0_i32_0 = arith.constant 0 : i32
    return %arg0, %c0_i32 : i32, i32
  }
}

</mosaic_0001>

<bundles_post_ra>
// kernel: tpu_custom_call.1
= control target key start
LH: loop header
LB: loop body
LE: loop exit
PB: predicated region body
PF: predicated region fallthrough
CT: control target
= control target key end

     0   :  { %14 = vsyncpa [#allocation3], 0  ;;  %s3102_s0 = inlined_call_operand.vmem [shape: bf16[160,128], index: 0, kind: input, shape index: {}]   ;;  %s3103_s1 = inlined_call_operand.hbm [shape: f32[128,128], index: 1, kind: input, shape index: {}]   ;;  %s3104_s2 = inlined_call_operand.vmem [shape: f32[80,1], index: 2, kind: input, shape index: {}]   ;;  %s3105_s3 = inlined_call_operand.hbm [shape: bf16[3,128,128], index: 3, kind: input, shape index: {}]   ;;  %s3106_s4 = inlined_call_operand.vmem [shape: f32[1,128], index: 4, kind: input, shape index: {}]   ;;  %s3107_s5 = inlined_call_operand.vmem [shape: f32[1,128], index: 5, kind: input, shape index: {}]   ;;  %s3108_s6 = inlined_call_operand.hbm [shape: bf16[3,128,128], index: 6, kind: input, shape index: {}]   ;;  %s3109_s7 = inlined_call_operand.vmem [shape: f32[1,128], index: 7, kind: input, shape index: {}]   ;;  %s3110_s8 = inlined_call_operand.vmem [shape: f32[1,128], index: 8, kind: input, shape index: {}]   ;;  %s3111_s9 = inlined_call_operand.hbm [shape: f32[128,128], index: 9, kind: output, shape index: {}]  }
   0x1   :  { %16 = vsyncpa [#allocation3 + $0x1], 0 }
   0x2   :  { %17 = vsyncpa [#allocation6], 0 }
   0x3   :  { %18 = vsyncpa [#allocation4], 0 }
   0x4   :  { %20 = vsyncpa [#allocation4 + $0x1], 0  ;;  %s2519_s30 = smov 0   ;;  %s2521_s10 = smov 0  }
   0x5   :  { %s2523_s11 = smov 0   ;;  %s2525_s12 = smov 0  }
   0x6 LB: > { %s2540_s13 = sadd.s32 4294967295, %s2454_s12   ;;  %s1795_s14 = sadd.s32 4294967294, %s2454_s12   ;;  %s2454_s12 = sphi %s2525_s12, %s3134_s12   ;;  %s2450_s11 = sphi %s2523_s11, %s3133_s11   ;;  %s2446_s10 = sphi %s2521_s10, %s3132_s10   ;;  %s2442_s30 = sphi %s2519_s30, %s3131_s30  }
   0x7   : > { %p72_p0 = scmp.ne.s32.totalorder %s2446_s10, %s2442_s30  ;;  %p3112_p1 = scmp.eq.s32.totalorder %s2540_s13, 0 }
   0x8   : > { %p249_p3 = scmp.eq.s32.totalorder %s1795_s14, 1  ;;  %p1796_p5 = scmp.ge.s32.totalorder %s2454_s12, 1 }
   0x9   : > { %p2549_p4 = por %p3112_p1, %p72_p0  ;;  %p256_p7 = scmp.lt.s32.totalorder %s2454_s12, 3 }
   0xa   : > { %p2554_p6 = por %p249_p3, %p72_p0  ;;  %s2456_s18 = smov [#allocation5]  }
   0xb   : > { %s3116_s15 = scalar_select %p2549_p4, 1, 0 }
   0xc   : > { %s3117_s16 = scalar_select %p2554_p6, 1, 0 }
   0xd   : > { %p2559_p8 = pnand %p1796_p5, %p256_p7  ;;  %s271_s19 = sshll.u32 %s2456_s18, 4  ;;  %s2563_s19 = int_to_ptr.vmem [resolvable:$true] %s271_s19 }
   0xe   : > { %3118 = sst [smem:[#allocation12_spill]] %s3117_s16  ;;  %s2457_s21 = smov [#allocation7]  }
   0xf   : > { %p2179_p9 = pneg %p2559_p8  ;;  %s290_s22 = sshll.u32 %s2457_s21, 4  ;;  %s2574_s22 = int_to_ptr.vmem [resolvable:$true] %s290_s22 }
  0x10   : > { %s2298_s25 = scalar_lea.hbm %s3105_s3, 3072 }
  0x11   : > { %p2570_p11 = pnand %p2179_p9, %p3112_p1  ;;  %p2299_p12 = scmp.ne.s32.totalorder %s3105_s3, %s2298_s25 }
  0x12   : > { %p2305_p5 = scmp.lt.u32.totalorder %s2298_s25, %s3105_s3 }
  0x13   : > { %p2300_p13 = pneg %p2570_p11 }
  0x15   : > { %p2301_p0 = pnand %p2300_p13, %p2299_p12 }
  0x17   : > { %p2302_p3 = pneg %p2301_p0 }
  0x19   : > { %p2307_p7 = pnand %p2305_p5, %p2302_p3 }
  0x1b   : > { %2310 = shalt.err (!%p2307_p7)
}
  0x1c   : > { %s2311_s14 = scalar_lea.vmem %s2563_s19, 3072  ;;  %p2319_p2 = scmp.lt.s32.totalorder %s2563_s19, %s2563_s19 }
  0x1d   : > { %p2312_p9 = scmp.ne.s32.totalorder %s2563_s19, %s2311_s14  ;;  %p2320_p12 = scmp.lt.s32.totalorder %s2311_s14, %s2311_s14 }
  0x1f   : > { %p2314_p10 = pnand %p2312_p9, %p2300_p13  ;;  %p2321_p0 = por %p2320_p12, %p2319_p2 }
  0x21   : > { %p2315_p1 = pneg %p2314_p10 }
  0x23   : > { %p2322_p6 = pnand %p2321_p0, %p2315_p1 }
  0x25   : > { %2325 = shalt.err (!%p2322_p6)
}
  0x26   : > { %s2458_s18 = smov 64   ;;  %s2459_s21 = smov 4  }
  0x27   : > { %2182 = dma.hbm_to_vmem [thread:$0]  (!%p2570_p11), %s3105_s3, 3072, %s2563_s19, [#allocation6], %s2458_s18, %s2458_s18, %s2459_s21  }
  0x28   : > { %s2326_s27 = scalar_lea.hbm %s3108_s6, 3072 }
  0x29   : > { %p2327_p2 = scmp.ne.s32.totalorder %s3108_s6, %s2326_s27  ;;  %p2333_p10 = scmp.lt.u32.totalorder %s2326_s27, %s3108_s6 }
  0x2b   : > { %p2329_p1 = pnand %p2327_p2, %p2300_p13 }
  0x2d   : > { %p2330_p6 = pneg %p2329_p1 }
  0x2f   : > { %p2335_p3 = pnand %p2333_p10, %p2330_p6 }
  0x31   : > { %2338 = shalt.err (!%p2335_p3)
}
  0x32   : > { %s2339_s19 = scalar_lea.vmem %s2574_s22, 3072  ;;  %p2347_p12 = scmp.lt.s32.totalorder %s2574_s22, %s2574_s22 }
  0x33   : > { %p2340_p5 = scmp.ne.s32.totalorder %s2574_s22, %s2339_s19  ;;  %p2348_p0 = scmp.lt.s32.totalorder %s2339_s19, %s2339_s19 }
  0x35   : > { %p2342_p7 = pnand %p2340_p5, %p2300_p13  ;;  %p2349_p2 = por %p2348_p0, %p2347_p12 }
  0x37   : > { %p2343_p9 = pneg %p2342_p7 }
  0x39   : > { %p2350_p1 = pnand %p2349_p2, %p2343_p9 }
  0x3b   : > { %2353 = shalt.err (!%p2350_p1)
}
  0x3c   : > { %2185 = dma.hbm_to_vmem [thread:$0]  (!%p2570_p11), %s3108_s6, 3072, %s2574_s22, [#allocation6], %s2458_s18, %s2458_s18, %s2459_s21  }
  0x3d   : > { %s2629_s24 = sadd.s32 1, %s2454_s12   ;;  %s59_s20 = sadd.s32 1, %s2450_s11 }
  0x3e   : > { %s56_s25 = ssub.s32 %s2454_s12, %s2629_s24  ;;  %p66_p13 = scmp.ne.s32.totalorder %s2450_s11, %s2446_s10 }
  0x3f   : > { %p57_p6 = scmp.eq.s32.totalorder %s56_s25, 0  ;;  %p67_p10 = scmp.eq.s32.totalorder %s2454_s12, 0 }
  0x40   : > { %p3121_p3 = scmp.eq.s32.totalorder %s2540_s13, 1  ;;  %p2196_p7 = scmp.lt.s32.totalorder %s2454_s12, 2 }
  0x41   : > { %s2645_s27 = scalar_select %p57_p6, %s2450_s11, %s59_s20  }
  0x42   : > { %p2639_p5 = por %p3121_p3, %p66_p13  ;;  %p68_p9 = por %p67_p10, %p66_p13 }
  0x43   : > { %s319_s28 = sand.u32 1, %s2450_s11   ;;  %s1871_s22 = sshll.u32 %s2454_s12, 10 }
  0x44   : > { %s3122_s26 = scalar_select %p2639_p5, 1, 0 }
  0x45   : > { %s1800_s29 = sshll.u32 %s319_s28, 6  ;;  %s2652_s14 = scalar_lea.hbm %s3103_s1, %s1871_s22 }
  0x46   : > { %s323_s19 = scalar_lea.vmem [#allocation2], %s1800_s29  ;;  %p2656_p11 = pnand %p2196_p7, %p68_p9 }
  0x47   : > { %s330_s16 = sshll.u32 %s323_s19, 4  ;;  %s2660_s20 = scalar_lea.sflag [#allocation3], %s319_s28  ;;  %s2654_s16 = int_to_ptr.vmem [resolvable:$true] %s330_s16 }
  0x48   : > { %s2354_s25 = scalar_lea.hbm %s2652_s14, 1024  ;;  %p2356_p0 = pneg %p2656_p11 }
  0x49   : > { %p2355_p12 = scmp.ne.s32.totalorder %s2652_s14, %s2354_s25  ;;  %s2359_s18 = scalar_lea.hbm %s3103_s1, 2048 }
  0x4a   : > { %p2360_p13 = scmp.lt.u32.totalorder %s2652_s14, %s3103_s1  ;;  %p2361_p6 = scmp.lt.u32.totalorder %s2359_s18, %s2354_s25 }
  0x4b   : > { %p2357_p2 = pnand %p2356_p0, %p2355_p12  ;;  %p2363_p3 = scmp.lt.u32.totalorder %s2354_s25, %s2652_s14 }
  0x4c   : > { %p2362_p10 = por %p2361_p6, %p2360_p13 }
  0x4d   : > { %p2358_p1 = pneg %p2357_p2 }
  0x4e   : > { %p2364_p7 = por %p2363_p3, %p2362_p10 }
  0x50   : > { %p2365_p9 = pnand %p2364_p7, %p2358_p1 }
  0x52   : > { %2368 = shalt.err (!%p2365_p9)
}
  0x53   : > { %s2369_s28 = scalar_lea.vmem %s2654_s16, 1024  ;;  %s2460_s29 = smov [#allocation2]  }
  0x54   : > { %p2370_p12 = scmp.ne.s32.totalorder %s2654_s16, %s2369_s28  ;;  %s2374_s22 = sshll.u32 %s2460_s29, 4  ;;  %s2375_s22 = int_to_ptr.vmem [resolvable:$false] %s2374_s22 }
  0x55   : > { %s2376_s21 = scalar_lea.vmem %s2375_s22, 2048  ;;  %p2377_p4 = scmp.lt.s32.totalorder %s2654_s16, %s2375_s22 }
  0x56   : > { %p2372_p2 = pnand %p2370_p12, %p2356_p0  ;;  %p2378_p13 = scmp.lt.s32.totalorder %s2376_s21, %s2369_s28 }
  0x58   : > { %p2373_p5 = pneg %p2372_p2  ;;  %p2379_p6 = por %p2378_p13, %p2377_p4 }
  0x5a   : > { %p2380_p10 = pnand %p2379_p6, %p2373_p5 }
  0x5c   : > { %2383 = shalt.err (!%p2380_p10)
}
  0x5d   : > { %s2461_s25 = smov 128   ;;  %s2462_s18 = smov 8  }
  0x5e   : > { %2189 = dma.hbm_to_vmem [thread:$0]  (!%p2656_p11), %s2652_s14, 1024, %s2654_s16, %s2660_s20, %s2461_s25, %s2461_s25, %s2462_s18  }
  0x5f   : > { %342 = sbr.rel (%p2559_p8) target bundleno = 730 (0x2da), region = 56  ;;  %s2691_s19 = sand.u32 (!%p2559_p8), 1, %s2446_s10  }
  0x60   : > { %s1804_s28 = sshll.u32 (!%p2559_p8), %s2691_s19, 6  ;;  %s345_s29 = scalar_lea.sflag (!%p2559_p8), [#allocation3], %s2691_s19 }
  0x61   : > { %s2697_s22 = scalar_lea.vmem (!%p2559_p8), [#allocation2], %s1804_s28  ;;  %p3124_p4 = scmp.ne.s32.totalorder (!%p2559_p8), %s3116_s15, 0 }
  0x66   : > { %2429 = dma.done.wait (%p3124_p4), %s345_s29, 1024  }
  0x67   : > { %2431 = vsyncadd (%p3124_p4), %s345_s29, 4294966272  ;;  %p3125_p5 = scmp.eq.s32.totalorder %s2540_s13, 0 }
  0x69   : > { %2433 = dma.done.wait (%p3125_p5), [#allocation6], 6144   ;;  %p3126_p8 = pmov %p3125_p5 }
  0x6a   : > { %v2463_v0 = vmov 0.0   ;;  %vm2464_vm0 = vmmov 0   ;;  %v2465_v1 = vmov 0   ;;  %v2245_v2 = vld [vmem:[#allocation5] sm:$0xff]   ;;  %s396_s15 = smul.u32 10, %s2540_s13  ;;  %v2247_v4 = vld [vmem:[#allocation5 + $0x8] sm:$0xff]  }
  0x6b   : > { %2435 = vsyncadd (%p3126_p8), [#allocation6], 4294961152  ;;  %1951 = vmatprep.subr.bf16.mxu0 %v2463_v0  ;;  %1987 = vmatprep.subr.bf16.mxu1 %v2463_v0  ;;  %v2246_v3 = vld [vmem:[#allocation5 + $0x40] sm:$0xff]   ;;  %v2248_v5 = vld [vmem:[#allocation5 + $0x48] sm:$0xff]   ;;  %vm868_vm1 = vcmask 1046528   ;;  %vm918_vm2 = vcmask 1045504  }
  0x6c   : > { %1967 = vmatprep.mubr.msk.bf16.mxu0 %vm2464_vm0, %v2463_v0  ;;  %2003 = vmatprep.mubr.msk.bf16.mxu1 %vm2464_vm0, %v2463_v0  ;;  %p397_p11 = scmp.lt.s32.totalorder %s396_s15, 19  ;;  %v2249_v6 = vld [vmem:[#allocation5 + $0x10] sm:$0xff]   ;;  %v2251_v8 = vld [vmem:[#allocation5 + $0x18] sm:$0xff]   ;;  %v2253_v10 = vld [vmem:[#allocation5 + $0x20] sm:$0xff]   ;;  %s3002_s20 = scalar_lea.vmem [#allocation8], %s1804_s28  ;;  %vm1624_vm3 = vcmask 1043456  }
  0x6d   : > { %2243 = vset.pattern.permute.xlu0 %v2465_v1  ;;  %2244 = vset.pattern.permute.xlu1 %v2465_v1  ;;  %v2250_v7 = vld [vmem:[#allocation5 + $0x50] sm:$0xff]   ;;  %v2252_v9 = vld [vmem:[#allocation5 + $0x58] sm:$0xff]   ;;  %v2254_v11 = vld [vmem:[#allocation5 + $0x60] sm:$0xff]   ;;  %s1872_s28 = sshll.u32 %s2540_s13, 10  ;;  %s1678_s13 = scalar_lea.sflag [#allocation4], %s2691_s19 }
  0x6e   : > { %1952 = vmatpush3.bf16.msra.mxu0 %v2245_v2  ;;  %1988 = vmatpush3.bf16.msra.mxu1 %v2246_v3  ;;  %s3136_s15 = smov (!%p397_p11, %s396_s15), 19  ;;  %v2255_v12 = vld [vmem:[#allocation5 + $0x28] sm:$0xff]   ;;  %v2257_v14 = vld [vmem:[#allocation5 + $0x30] sm:$0xff]   ;;  %v2259_v16 = vld [vmem:[#allocation5 + $0x38] sm:$0xff]   ;;  %s3053_s25 = scalar_lea.hbm %s3111_s9, %s1872_s28 }
  0x6f   : > { %1953 = vmatprep.subr.bf16.mxu0 %v2463_v0  ;;  %1989 = vmatprep.subr.bf16.mxu1 %v2463_v0  ;;  %s1808_s17 = sshll.u32 %s3136_s15, 2  ;;  %v2256_v13 = vld [vmem:[#allocation5 + $0x68] sm:$0xff]   ;;  %v2258_v15 = vld [vmem:[#allocation5 + $0x70] sm:$0xff]   ;;  %v2260_v17 = vld [vmem:[#allocation5 + $0x78] sm:$0xff]   ;;  %p3127_p1 = scmp.ne.s32.totalorder %s3122_s26, 0 }
  0x70   : > { %s2724_s23 = scalar_lea.vmem %s3102_s0, %s1808_s17  ;;  %v1002_v19 = vld [vmem:[%s3104_s2] sm:$0xff]  ;;  %v1004_v20 = vld [vmem:[%s3104_s2 + $0x10] sm:$0xff]  ;;  %v1003_v22 = vld [vmem:[%s3104_s2 + $0x8] sm:$0xff]  ;;  %s2466_s29 = smov [#allocation8]  }
  0x71   : > { %v2734_v18 = vld [vmem:[%s2724_s23] sm:$0xff]   ;;  %1014 = vperm.xlu0 %2243, %v1002_v19   ;;  %v2263_v23 = vld [vmem:[#allocation5 + $0x88] sm:$0xff]   ;;  %1024 = vperm.xlu1 %2244, %v1004_v20   ;;  %v1005_v24 = vld [vmem:[%s3104_s2 + $0x18] sm:$0xff]  ;;  %s2388_s15 = sshll.u32 %s2466_s29, 4  ;;  %s2389_s15 = int_to_ptr.vmem [resolvable:$false] %s2388_s15 }
  0x72   : > { %1954 = vmatpush3.bf16.msra.mxu0 %v2247_v4  ;;  %1990 = vmatpush3.bf16.msra.mxu1 %v2248_v5  ;;  %v2262_v21 = vld [vmem:[#allocation5 + $0x80] sm:$0xff]   ;;  %v2264_v25 = vld [vmem:[%s2724_s23 + $0x8] sm:$0xff]   ;;  %v2265_v27 = vld [vmem:[#allocation5 + $0x90] sm:$0xff]   ;;  %s2390_s17 = scalar_lea.vmem %s2389_s15, 2048 }
  0x73   : > { %1955 = vmatprep.subr.bf16.mxu0 %v2463_v0  ;;  %1991 = vmatprep.subr.bf16.mxu1 %v2463_v0  ;;  %v1006_v26 = vld [vmem:[%s3104_s2 + $0x20] sm:$0xff]  ;;  %v1007_v28 = vld [vmem:[%s3104_s2 + $0x28] sm:$0xff]  ;;  %v1008_v29 = vld [vmem:[%s3104_s2 + $0x30] sm:$0xff] }
  0x74   : > { %v2267_v30 = vld [vmem:[#allocation5 + $0x98] sm:$0xff]   ;;  %v2266_v32 = vld [vmem:[%s2724_s23 + $0x10] sm:$0xff]   ;;  %v1010_v33 = vld [vmem:[%s3104_s2 + $0x40] sm:$0xff] }
  0x75   : > { %1019 = vperm.xlu0 %2243, %v1003_v22   ;;  %1029 = vperm.xlu1 %2244, %v1005_v24   ;;  %v1009_v31 = vld [vmem:[%s3104_s2 + $0x38] sm:$0xff]  ;;  %v2268_v34 = vld [vmem:[#allocation5 + $0xa0] sm:$0xff]   ;;  %v1011_v35 = vld [vmem:[%s3104_s2 + $0x48] sm:$0x3f] }
  0x76   : > { %1956 = vmatpush3.bf16.msra.mxu0 %v2249_v6  ;;  %1992 = vmatpush3.bf16.msra.mxu1 %v2250_v7  ;;  %v2270_v36 = vld [vmem:[#allocation5 + $0xa8] sm:$0xff]   ;;  %v2269_v37 = vld [vmem:[%s2724_s23 + $0x18] sm:$0xff]   ;;  %v2271_v38 = vld [vmem:[#allocation5 + $0xb0] sm:$0xff]  }
  0x77   : > { %1957 = vmatprep.subr.bf16.mxu0 %v2463_v0  ;;  %1993 = vmatprep.subr.bf16.mxu1 %v2463_v0  ;;  %v2273_v39 = vld [vmem:[#allocation5 + $0xb8] sm:$0xff]   ;;  %v2272_v40 = vld [vmem:[%s2724_s23 + $0x20] sm:$0xff]   ;;  %v2275_v42 = vld [vmem:[#allocation7 + $0x8] sm:$0xff]  }
  0x78   : > { %v2274_v41 = vld [vmem:[#allocation7] sm:$0xff]   ;;  %v2278_v44 = vld [vmem:[#allocation7 + $0x48] sm:$0xff]   ;;  %v2277_v45 = vld [vmem:[#allocation7 + $0x10] sm:$0xff]  }
  0x79   : > { %1034 = vperm.xlu0 %2243, %v1006_v26   ;;  %1039 = vperm.xlu1 %2244, %v1007_v28   ;;  %v2276_v43 = vld [vmem:[#allocation7 + $0x40] sm:$0xff]   ;;  %v2280_v46 = vld [vmem:[#allocation7 + $0x50] sm:$0xff]   ;;  %v2279_v47 = vld [vmem:[#allocation7 + $0x18] sm:$0xff]  }
  0x7a   : > { %1958 = vmatpush3.bf16.msra.mxu0 %v2251_v8  ;;  %1994 = vmatpush3.bf16.msra.mxu1 %v2252_v9  ;;  %v2282_v48 = vld [vmem:[#allocation7 + $0x58] sm:$0xff]   ;;  %v2281_v49 = vld [vmem:[#allocation7 + $0x20] sm:$0xff]   ;;  %v2284_v51 = vld [vmem:[#allocation7 + $0x28] sm:$0xff]  }
  0x7b   : > { %1959 = vmatprep.subr.bf16.mxu0 %v2463_v0  ;;  %1995 = vmatprep.subr.bf16.mxu1 %v2463_v0  ;;  %v2283_v50 = vld [vmem:[#allocation7 + $0x60] sm:$0xff]   ;;  %v2285_v52 = vld [vmem:[#allocation7 + $0x68] sm:$0xff]   ;;  %v2286_v53 = vld [vmem:[#allocation7 + $0x30] sm:$0xff]  }
  0x7c   : > { %v2287_v54 = vld [vmem:[#allocation7 + $0x70] sm:$0xff]   ;;  %v2288_v55 = vld [vmem:[#allocation7 + $0x38] sm:$0xff]  }
  0x7d   : > { %1044 = vperm.xlu0 %2243, %v1008_v29   ;;  %1049 = vperm.xlu1 %2244, %v1009_v31   ;;  %v2289_v56 = vld [vmem:[#allocation7 + $0x78] sm:$0xff]  }
  0x7e   : > { %1960 = vmatpush3.bf16.msra.mxu0 %v2253_v10  ;;  %1996 = vmatpush3.bf16.msra.mxu1 %v2254_v11 }
  0x7f   : > { %1961 = vmatprep.subr.bf16.mxu0 %v2463_v0  ;;  %1997 = vmatprep.subr.bf16.mxu1 %v2463_v0 }
  0x81   : > { %1054 = vperm.xlu0 %2243, %v1010_v33   ;;  %1059 = vperm.xlu1 %2244, %v1011_v35  }
  0x82   : > { %1962 = vmatpush3.bf16.msra.mxu0 %v2255_v12  ;;  %1998 = vmatpush3.bf16.msra.mxu1 %v2256_v13 }
  0x83   : > { %1963 = vmatprep.subr.bf16.mxu0 %v2463_v0  ;;  %1999 = vmatprep.subr.bf16.mxu1 %v2463_v0 }
  0x86   : > { %1964 = vmatpush3.bf16.msra.mxu0 %v2257_v14  ;;  %2000 = vmatpush3.bf16.msra.mxu1 %v2258_v15 }
  0x87   : > { %1965 = vmatprep.subr.bf16.mxu0 %v2463_v0  ;;  %2001 = vmatprep.subr.bf16.mxu1 %v2463_v0 }
  0x8a   : > { %1966 = vmatpush3.bf16.msra.mxu0 %v2259_v16  ;;  %2002 = vmatpush3.bf16.msra.mxu1 %v2260_v17 }
  0x8b   : > { %2023 = vmatprep.subr.bf16.mxu0 %v2463_v0  ;;  %2059 = vmatprep.subr.bf16.mxu1 %v2463_v0 }
  0x8d   : > { %1968 = vmatmul.mubr.bf16.vlgmr.msra.gmra.mrb[0].mxu0 %v2734_v18  ;;  %2004 = vmatmul.mubr.bf16.vlgmr.msra.gmra.mrb[0].mxu1 %v2734_v18 }
  0x8e   : > { %2024 = vmatpush3.bf16.msra.mxu0 %v2262_v21  ;;  %1971 = vmatprep.mubr.msk.bf16.mxu0 %vm2464_vm0, %v2463_v0 }
  0x8f   : > { %2025 = vmatprep.subr.bf16.mxu0 %v2463_v0  ;;  %2007 = vmatprep.mubr.msk.bf16.mxu1 %vm2464_vm0, %v2463_v0 }
  0x90   : > { %2060 = vmatpush3.bf16.msra.mxu1 %v2274_v41 }
  0x91   : > { %2061 = vmatprep.subr.bf16.mxu1 %v2463_v0 }
  0x92   : > { %2026 = vmatpush3.bf16.msra.mxu0 %v2263_v23 }
  0x93   : > { %2027 = vmatprep.subr.bf16.mxu0 %v2463_v0 }
  0x94   : > { %2062 = vmatpush3.bf16.msra.mxu1 %v2275_v42 }
  0x95   : > { %1972 = vmatmul.mubr.bf16.gmra.mrb[4].mxu0 %v2264_v25  ;;  %2008 = vmatmul.mubr.bf16.gmra.mrb[4].mxu1 %v2264_v25 }
  0x96   : > { %2028 = vmatpush3.bf16.msra.mxu0 %v2265_v27  ;;  %1975 = vmatprep.mubr.msk.bf16.mxu0 %vm2464_vm0, %v2463_v0 }
  0x97   : > { %2011 = vmatprep.mubr.msk.bf16.mxu1 %vm2464_vm0, %v2463_v0  ;;  %2029 = vmatprep.subr.bf16.mxu0 %v2463_v0 }
  0x98   : > { %2063 = vmatprep.subr.bf16.mxu1 %v2463_v0 }
  0x99   : > { %2064 = vmatpush3.bf16.msra.mxu1 %v2277_v45 }
  0x9a   : > { %2030 = vmatpush3.bf16.msra.mxu0 %v2267_v30  ;;  %2065 = vmatprep.subr.bf16.mxu1 %v2463_v0 }
  0x9b   : > { %2031 = vmatprep.subr.bf16.mxu0 %v2463_v0 }
  0x9d   : > { %1976 = vmatmul.mubr.bf16.gmra.mrb[8].mxu0 %v2266_v32  ;;  %2012 = vmatmul.mubr.bf16.gmra.mrb[8].mxu1 %v2266_v32 }
  0x9e   : > { %2032 = vmatpush3.bf16.msra.mxu0 %v2268_v34  ;;  %1979 = vmatprep.mubr.msk.bf16.mxu0 %vm2464_vm0, %v2463_v0 }
  0x9f   : > { %2015 = vmatprep.mubr.msk.bf16.mxu1 %vm2464_vm0, %v2463_v0  ;;  %2033 = vmatprep.subr.bf16.mxu0 %v2463_v0 }
  0xa0   : > { %2066 = vmatpush3.bf16.msra.mxu1 %v2279_v47 }
  0xa1   : > { %2067 = vmatprep.subr.bf16.mxu1 %v2463_v0 }
  0xa2   : > { %2034 = vmatpush3.bf16.msra.mxu0 %v2270_v36 }
  0xa3   : > { %2035 = vmatprep.subr.bf16.mxu0 %v2463_v0 }
  0xa4   : > { %2068 = vmatpush3.bf16.msra.mxu1 %v2281_v49 }
  0xa5   : > { %1980 = vmatmul.mubr.bf16.gmra.mrb[12].mxu0 %v2269_v37  ;;  %2016 = vmatmul.mubr.bf16.gmra.mrb[12].mxu1 %v2269_v37 }
  0xa6   : > { %1983 = vmatprep.mubr.msk.bf16.mxu0 %vm2464_vm0, %v2463_v0  ;;  %2019 = vmatprep.mubr.msk.bf16.mxu1 %vm2464_vm0, %v2463_v0 }
  0xa7   : > { %2036 = vmatpush3.bf16.msra.mxu0 %v2271_v38  ;;  %2069 = vmatprep.subr.bf16.mxu1 %v2463_v0 }
  0xa8   : > { %2037 = vmatprep.subr.bf16.mxu0 %v2463_v0  ;;  %2070 = vmatpush3.bf16.msra.mxu1 %v2284_v51 }
  0xa9   : > { %2071 = vmatprep.subr.bf16.mxu1 %v2463_v0 }
  0xab   : > { %2038 = vmatpush3.bf16.msra.mxu0 %v2273_v39 }
  0xac   : > { %2095 = vmatprep.subr.bf16.mxu0 %v2463_v0  ;;  %2072 = vmatpush3.bf16.msra.mxu1 %v2286_v53 }
  0xad   : > { %1984 = vmatmul.mubr.bf16.gmra.mrb[16].mxu0 %v2272_v40  ;;  %2020 = vmatmul.mubr.bf16.gmra.mrb[16].mxu1 %v2272_v40 }
  0xae   : > { %2039 = vmatprep.mubr.msk.bf16.mxu0 %vm2464_vm0, %v2463_v0  ;;  %2075 = vmatprep.mubr.msk.bf16.mxu1 %vm2464_vm0, %v2463_v0 }
  0xaf   : > { %2073 = vmatprep.subr.bf16.mxu1 %v2463_v0 }
  0xb0   : > { %2074 = vmatpush3.bf16.msra.mxu1 %v2288_v55 }
  0xb1   : > { %2131 = vmatprep.subr.bf16.mxu1 %v2463_v0 }
  0xb5   : > { %2040 = vmatmul.mubr.bf16.vlgmr.msra.gmra.mrb[20].mxu0 %v2734_v18 }
  0xb6   : > { %2043 = vmatprep.mubr.msk.bf16.mxu0 %vm2464_vm0, %v2463_v0  ;;  %2096 = vmatpush3.bf16.msra.mxu0 %v2276_v43 }
  0xb7   : > { %2097 = vmatprep.subr.bf16.mxu0 %v2463_v0 }
  0xba   : > { %2098 = vmatpush3.bf16.msra.mxu0 %v2278_v44 }
  0xbb   : > { %2099 = vmatprep.subr.bf16.mxu0 %v2463_v0 }
  0xbd   : > { %2044 = vmatmul.mubr.bf16.gmra.mrb[24].mxu0 %v2264_v25 }
  0xbe   : > { %2047 = vmatprep.mubr.msk.bf16.mxu0 %vm2464_vm0, %v2463_v0  ;;  %2100 = vmatpush3.bf16.msra.mxu0 %v2280_v46 }
  0xbf   : > { %2101 = vmatprep.subr.bf16.mxu0 %v2463_v0 }
  0xc2   : > { %2102 = vmatpush3.bf16.msra.mxu0 %v2282_v48 }
  0xc3   : > { %2103 = vmatprep.subr.bf16.mxu0 %v2463_v0 }
  0xc5   : > { %2048 = vmatmul.mubr.bf16.gmra.mrb[28].mxu0 %v2266_v32 }
  0xc6   : > { %2051 = vmatprep.mubr.msk.bf16.mxu0 %vm2464_vm0, %v2463_v0  ;;  %2104 = vmatpush3.bf16.msra.mxu0 %v2283_v50 }
  0xc7   : > { %2105 = vmatprep.subr.bf16.mxu0 %v2463_v0 }
  0xca   : > { %2106 = vmatpush3.bf16.msra.mxu0 %v2285_v52 }
  0xcb   : > { %2107 = vmatprep.subr.bf16.mxu0 %v2463_v0 }
  0xcd   : > { %2052 = vmatmul.mubr.bf16.gmra.mrb[32].mxu0 %v2269_v37 }
  0xce   : > { %2055 = vmatprep.mubr.msk.bf16.mxu0 %vm2464_vm0, %v2463_v0  ;;  %2108 = vmatpush3.bf16.msra.mxu0 %v2287_v54 }
  0xcf   : > { %2109 = vmatprep.subr.bf16.mxu0 %v2463_v0 }
  0xd2   : > { %2110 = vmatpush3.bf16.msra.mxu0 %v2289_v56 }
  0xd5   : > { %2056 = vmatmul.mubr.bf16.gmra.mrb[36].mxu0 %v2272_v40 }
  0xd6   : > { %2111 = vmatprep.mubr.msk.bf16.mxu0 %vm2464_vm0, %v2463_v0 }
 0x160   : > { %v543_v57 = vpop.f32.mrb[0].mxu0  ;;  %v681_v58 = vpop.f32.mrb[0].mxu1 }
 0x161   : > { %v1969_v59 = vpop.f32.mrb[1].mxu0  ;;  %v869_v60 = vrot.slane %v681_v58, 1  ;;  %v2005_v61 = vpop.f32.mrb[1].mxu1 }
 0x162   : > { %v546_v62 = vpop.f32.mrb[2].mxu0  ;;  %v684_v63 = vpop.f32.mrb[2].mxu1 }
 0x163   : > { %v1970_v1 = vpop.f32.mrb[3].mxu0  ;;  %v870_v2 = vrot.slane %v684_v63, 1  ;;  %v2006_v3 = vpop.f32.mrb[3].mxu1 }
 0x165   : > { %v871_v4 = vsel %vm868_vm1, %v869_v60, %v870_v2 }
 0x166   : > { %v2829_v5 = vadd.f32 %v871_v4, %v543_v57 }
 0x168   : > { %v551_v6 = vpop.f32.mrb[4].mxu0  ;;  %v689_v7 = vpop.f32.mrb[4].mxu1 }
 0x169   : > { %v1973_v8 = vpop.f32.mrb[5].mxu0  ;;  %v872_v9 = vrot.slane %v689_v7, 1  ;;  %v2009_v10 = vpop.f32.mrb[5].mxu1 }
 0x16a   : > { %v554_v11 = vpop.f32.mrb[6].mxu0  ;;  %v692_v12 = vpop.f32.mrb[6].mxu1  ;;  %v2861_v8 = vld [vmem:[%s3106_s4] ss:$0 sm:$0xff] }
 0x16b   : > { %v1974_v13 = vpop.f32.mrb[7].mxu0  ;;  %v873_v14 = vsel %vm868_vm1, %v870_v2, %v872_v9  ;;  %v874_v15 = vrot.slane %v692_v12, 1  ;;  %v2010_v16 = vpop.f32.mrb[7].mxu1  ;;  %v2868_v12 = vld [vmem:[%s3107_s5] ss:$0 sm:$0xff] }
 0x16c   : > { %v2832_v17 = vadd.f32 %v873_v14, %v546_v62 }
 0x16d   : > { %v875_v18 = vsel %vm868_vm1, %v872_v9, %v874_v15 }
 0x16e   : > { %v2835_v19 = vadd.f32 %v875_v18, %v551_v6 }
 0x170   : > { %v559_v20 = vpop.f32.mrb[8].mxu0  ;;  %v697_v21 = vpop.f32.mrb[8].mxu1 }
 0x171   : > { %v1977_v22 = vpop.f32.mrb[9].mxu0  ;;  %v876_v23 = vrot.slane %v697_v21, 1  ;;  %v2013_v24 = vpop.f32.mrb[9].mxu1 }
 0x172   : > { %v562_v25 = vpop.f32.mrb[10].mxu0  ;;  %v700_v26 = vpop.f32.mrb[10].mxu1 }
 0x173   : > { %v1978_v27 = vpop.f32.mrb[11].mxu0  ;;  %v877_v28 = vsel %vm868_vm1, %v874_v15, %v876_v23  ;;  %v878_v29 = vrot.slane %v700_v26, 1  ;;  %v2014_v30 = vpop.f32.mrb[11].mxu1 }
 0x174   : > { %v2838_v31 = vadd.f32 %v877_v28, %v554_v11 }
 0x175   : > { %v879_v32 = vsel %vm868_vm1, %v876_v23, %v878_v29 }
 0x176   : > { %v2841_v33 = vadd.f32 %v879_v32, %v559_v20 }
 0x178   : > { %v567_v34 = vpop.f32.mrb[12].mxu0  ;;  %v705_v35 = vpop.f32.mrb[12].mxu1 }
 0x179   : > { %v1981_v36 = vpop.f32.mrb[13].mxu0  ;;  %v880_v37 = vrot.slane %v705_v35, 1  ;;  %v2017_v38 = vpop.f32.mrb[13].mxu1 }
 0x17a   : > { %v570_v39 = vpop.f32.mrb[14].mxu0  ;;  %v708_v40 = vpop.f32.mrb[14].mxu1 }
 0x17b   : > { %v1982_v41 = vpop.f32.mrb[15].mxu0  ;;  %v881_v42 = vsel %vm868_vm1, %v878_v29, %v880_v37  ;;  %v882_v43 = vrot.slane %v708_v40, 1  ;;  %v2018_v44 = vpop.f32.mrb[15].mxu1 }
 0x17c   : > { %v2844_v45 = vadd.f32 %v881_v42, %v562_v25  ;;  %v1025_v40 = vpop.permute.xlu1 %1024  ;;  %v2290_v44 = vld [vmem:[#allocation7 + $0x80] sm:$0xff]  }
 0x17d   : > { %v883_v46 = vsel %vm868_vm1, %v880_v37, %v882_v43 }
 0x17e   : > { %v2847_v47 = vadd.f32 %v883_v46, %v567_v34 }
 0x180   : > { %v575_v48 = vpop.f32.mrb[16].mxu0  ;;  %v713_v49 = vpop.f32.mrb[16].mxu1 }
 0x181   : > { %v1985_v50 = vpop.f32.mrb[17].mxu0  ;;  %v884_v51 = vrot.slane %v713_v49, 1  ;;  %v2021_v52 = vpop.f32.mrb[17].mxu1 }
 0x182   : > { %v578_v53 = vpop.f32.mrb[18].mxu0  ;;  %v716_v54 = vpop.f32.mrb[18].mxu1 }
 0x183   : > { %v1986_v55 = vpop.f32.mrb[19].mxu0  ;;  %v885_v56 = vsel %vm868_vm1, %v882_v43, %v884_v51  ;;  %v886_v57 = vrot.slane %v716_v54, 1  ;;  %v2022_v58 = vpop.f32.mrb[19].mxu1 }
 0x184   : > { %v2850_v59 = vadd.f32 %v885_v56, %v570_v39  ;;  %v2291_v55 = vld [vmem:[#allocation7 + $0x88] sm:$0xff]  }
 0x185   : > { %v887_v60 = vsel %vm868_vm1, %v884_v51, %v886_v57  ;;  %v2853_v61 = vadd.f32 %v886_v57, %v578_v53 }
 0x186   : > { %v2855_v62 = vadd.f32 %v887_v60, %v575_v48 }
 0x188   : > { %v819_v63 = vpop.f32.mrb[20].mxu0 }
 0x189   : > { %v2041_v1 = vpop.f32.mrb[21].mxu0  ;;  %v919_v3 = vrot.slane %v819_v63, 2 }
 0x18a   : > { %v822_v2 = vpop.f32.mrb[22].mxu0 }
 0x18b   : > { %v920_v4 = vrot.slane %v822_v2, 2  ;;  %v2042_v6 = vpop.f32.mrb[23].mxu0 }
 0x18d   : > { %v921_v7 = vsel %vm918_vm2, %v919_v3, %v920_v4 }
 0x18e   : > { %v948_v9 = vadd.f32 %v921_v7, %v2829_v5  ;;  %v1015_v5 = vpop.permute.xlu0 %1014  ;;  %v2292_v7 = vld [vmem:[#allocation7 + $0x90] sm:$0xff]  }
 0x190   : > { %v965_v10 = vmul.f32 %v2861_v8, %v948_v9  ;;  %v827_v11 = vpop.f32.mrb[24].mxu0 }
 0x191   : > { %v922_v13 = vrot.slane %v827_v11, 2  ;;  %v2045_v14 = vpop.f32.mrb[25].mxu0 }
 0x192   : > { %v830_v15 = vpop.f32.mrb[26].mxu0  ;;  %v982_v21 = vadd.f32 %v2868_v12, %v965_v10  ;;  %v1020_v36 = vpop.permute.xlu0 %1019 }
 0x193   : > { %v923_v16 = vsel %vm918_vm2, %v920_v4, %v922_v13  ;;  %v924_v18 = vrot.slane %v830_v15, 2  ;;  %v2046_v20 = vpop.f32.mrb[27].mxu0 }
 0x194   : > { %v949_v22 = vadd.f32 %v923_v16, %v2832_v17  ;;  %v992_v26 = vmax.f32 %v982_v21, 0.0 }
 0x195   : > { %v925_v23 = vsel %vm918_vm2, %v922_v13, %v924_v18 }
 0x196   : > { %v966_v24 = vmul.f32 %v2861_v8, %v949_v22  ;;  %v950_v25 = vadd.f32 %v925_v23, %v2835_v19  ;;  %v1062_v39 = vmul.f32 %v1015_v5, %v992_v26 }
 0x198   : > { %v983_v27 = vadd.f32 %v2868_v12, %v966_v24  ;;  %v967_v28 = vmul.f32 %v2861_v8, %v950_v25  ;;  %v835_v29 = vpop.f32.mrb[28].mxu0 }
 0x199   : > { %v926_v30 = vrot.slane %v835_v29, 2  ;;  %v2049_v32 = vpop.f32.mrb[29].mxu0 }
 0x19a   : > { %v993_v34 = vmax.f32 %v983_v27, 0.0  ;;  %v838_v35 = vpop.f32.mrb[30].mxu0  ;;  %v984_v42 = vadd.f32 %v2868_v12, %v967_v28 }
 0x19b   : > { %v927_v17 = vsel %vm918_vm2, %v924_v18, %v926_v30  ;;  %v928_v37 = vrot.slane %v838_v35, 2  ;;  %v2050_v38 = vpop.f32.mrb[31].mxu0  ;;  %v1035_v18 = vpop.permute.xlu0 %1034 }
 0x19c   : > { %v1063_v41 = vmul.f32 %v1020_v36, %v993_v34  ;;  %v951_v19 = vadd.f32 %v927_v17, %v2838_v31  ;;  %v994_v52 = vmax.f32 %v984_v42, 0.0  ;;  %v2294_v34 = vld [vmem:[#allocation7 + $0xa0] sm:$0xff]  }
 0x19d   : > { %v929_v43 = vsel %vm918_vm2, %v926_v30, %v928_v37 }
 0x19e   : > { %v968_v46 = vmul.f32 %v2861_v8, %v951_v19  ;;  %v952_v48 = vadd.f32 %v929_v43, %v2841_v33  ;;  %v2884_v49 = vpack.c.bf16 %v1063_v41, %v1062_v39  ;;  %v1030_v33 = vpop.permute.xlu1 %1029  ;;  %v1064_v2 = vmul.f32 %v1025_v40, %v994_v52  ;;  %v2296_v52 = vld [vmem:[#allocation7 + $0xb0] sm:$0xff]  }
 0x19f   : > { %v1045_v38 = vpop.permute.xlu0 %1044 }
 0x1a0   : > { %v969_v50 = vmul.f32 %v2861_v8, %v952_v48  ;;  %v843_v51 = vpop.f32.mrb[32].mxu0  ;;  %2076 = vmatmul.mubr.bf16.vlgmr.msra.gmra.mrb[20].mxu1 %v2884_v49  ;;  %2112 = vmatmul.mubr.bf16.vlgmr.msra.gmra.mrb[40].mxu0 %v2884_v49  ;;  %v985_v31 = vadd.f32 %v2868_v12, %v968_v46 }
 0x1a1   : > { %v930_v53 = vrot.slane %v843_v51, 2  ;;  %v2053_v54 = vpop.f32.mrb[33].mxu0  ;;  %2132 = vmatpush3.bf16.msra.mxu1 %v2290_v44  ;;  %2079 = vmatprep.mubr.msk.bf16.mxu1 %vm2464_vm0, %v2463_v0 }
 0x1a2   : > { %v846_v56 = vpop.f32.mrb[34].mxu0  ;;  %2133 = vmatprep.subr.bf16.mxu1 %v2463_v0  ;;  %2115 = vmatprep.mubr.msk.bf16.mxu0 %vm2464_vm0, %v2463_v0  ;;  %v995_v57 = vmax.f32 %v985_v31, 0.0  ;;  %v986_v4 = vadd.f32 %v2868_v12, %v969_v50  ;;  %v1040_v13 = vpop.permute.xlu1 %1039 }
 0x1a3   : > { %v931_v58 = vsel %vm918_vm2, %v928_v37, %v930_v53  ;;  %v932_v60 = vrot.slane %v846_v56, 2  ;;  %v2054_v63 = vpop.f32.mrb[35].mxu0  ;;  %v1055_v50 = vpop.permute.xlu0 %1054 }
 0x1a4   : > { %v953_v1 = vadd.f32 %v931_v58, %v2844_v45  ;;  %v1065_v3 = vmul.f32 %v1030_v33, %v995_v57  ;;  %v996_v16 = vmax.f32 %v986_v4, 0.0 }
 0x1a5   : > { %v933_v6 = vsel %vm918_vm2, %v930_v53, %v932_v60  ;;  %2134 = vmatpush3.bf16.msra.mxu1 %v2291_v55 }
 0x1a6   : > { %v970_v9 = vmul.f32 %v2861_v8, %v953_v1  ;;  %v954_v10 = vadd.f32 %v933_v6, %v2847_v47  ;;  %v2901_v11 = vpack.c.bf16 %v1065_v3, %v1064_v2  ;;  %2135 = vmatprep.subr.bf16.mxu1 %v2463_v0  ;;  %v2293_v47 = vld [vmem:[#allocation7 + $0x98] sm:$0xff]   ;;  %v1066_v27 = vmul.f32 %v1035_v18, %v996_v16  ;;  %v1050_v35 = vpop.permute.xlu1 %1049 }
 0x1a8   : > { %v971_v14 = vmul.f32 %v2861_v8, %v954_v10  ;;  %v851_v45 = vpop.f32.mrb[36].mxu0  ;;  %2080 = vmatmul.mubr.bf16.gmra.mrb[24].mxu1 %v2901_v11  ;;  %2116 = vmatmul.mubr.bf16.gmra.mrb[44].mxu0 %v2901_v11  ;;  %v987_v15 = vadd.f32 %v2868_v12, %v970_v9 }
 0x1a9   : > { %v934_v20 = vrot.slane %v851_v45, 2  ;;  %v2057_v21 = vpop.f32.mrb[37].mxu0  ;;  %2136 = vmatpush3.bf16.msra.mxu1 %v2292_v7  ;;  %2083 = vmatprep.mubr.msk.bf16.mxu1 %vm2464_vm0, %v2463_v0 }
 0x1aa   : > { %v854_v22 = vpop.f32.mrb[38].mxu0  ;;  %2119 = vmatprep.mubr.msk.bf16.mxu0 %vm2464_vm0, %v2463_v0  ;;  %2137 = vmatprep.subr.bf16.mxu1 %v2463_v0  ;;  %v997_v5 = vmax.f32 %v987_v15, 0.0  ;;  %v988_v29 = vadd.f32 %v2868_v12, %v971_v14  ;;  %v1060_v43 = vpop.permute.xlu1 %1059 }
 0x1ab   : > { %v935_v23 = vsel %vm918_vm2, %v932_v60, %v934_v20  ;;  %v936_v24 = vrot.slane %v854_v22, 2  ;;  %v2058_v25 = vpop.f32.mrb[39].mxu0 }
 0x1ac   : > { %v955_v26 = vadd.f32 %v935_v23, %v2850_v59  ;;  %v1067_v28 = vmul.f32 %v1040_v13, %v997_v5 }
 0x1ad   : > { %v937_v30 = vsel %vm918_vm2, %v934_v20, %v936_v24  ;;  %v957_v32 = vadd.f32 %v936_v24, %v2853_v61  ;;  %2138 = vmatpush3.bf16.msra.mxu1 %v2293_v47  ;;  %v998_v61 = vmax.f32 %v988_v29, 0.0 }
 0x1ae   : > { %v972_v36 = vmul.f32 %v2861_v8, %v955_v26  ;;  %v956_v17 = vadd.f32 %v937_v30, %v2855_v62  ;;  %v1074_v37 = vpack.c.bf16 %v1067_v28, %v1066_v27  ;;  %2139 = vmatprep.subr.bf16.mxu1 %v2463_v0  ;;  %v2295_v62 = vld [vmem:[#allocation7 + $0xa8] sm:$0xff]  }
 0x1af   : > { %v974_v59 = vmul.f32 %v2861_v8, %v957_v32  ;;  %v1068_v44 = vmul.f32 %v1045_v38, %v998_v61 }
 0x1b0   : > { %v973_v39 = vmul.f32 %v2861_v8, %v956_v17  ;;  %2084 = vmatmul.mubr.bf16.gmra.mrb[28].mxu1 %v1074_v37  ;;  %2120 = vmatmul.mubr.bf16.gmra.mrb[48].mxu0 %v1074_v37  ;;  %v989_v40 = vadd.f32 %v2868_v12, %v972_v36 }
 0x1b1   : > { %v991_v41 = vadd.f32 %v2868_v12, %v974_v59  ;;  %2140 = vmatpush3.bf16.msra.mxu1 %v2294_v34  ;;  %2087 = vmatprep.mubr.msk.bf16.mxu1 %vm2464_vm0, %v2463_v0 }
 0x1b2   : > { %2123 = vmatprep.mubr.msk.bf16.mxu0 %vm2464_vm0, %v2463_v0  ;;  %v999_v19 = vmax.f32 %v989_v40, 0.0  ;;  %2141 = vmatprep.subr.bf16.mxu1 %v2463_v0  ;;  %v990_v8 = vadd.f32 %v2868_v12, %v973_v39  ;;  %v2297_v12 = vld [vmem:[#allocation7 + $0xb8] sm:$0xff]  }
 0x1b3   : > { %v1001_v42 = vmax.f32 %v991_v41, 0.0 }
 0x1b4   : > { %v1069_v46 = vmul.f32 %v1050_v35, %v999_v19  ;;  %v1000_v48 = vmax.f32 %v990_v8, 0.0 }
 0x1b5   : > { %2142 = vmatpush3.bf16.msra.mxu1 %v2295_v62  ;;  %v1071_v51 = vmul.f32 %v1060_v43, %v1001_v42 }
 0x1b6   : > { %v1075_v31 = vpack.c.bf16 %v1069_v46, %v1068_v44  ;;  %2143 = vmatprep.subr.bf16.mxu1 %v2463_v0  ;;  %v1070_v53 = vmul.f32 %v1055_v50, %v1000_v48 }
 0x1b8   : > { %2088 = vmatmul.mubr.bf16.gmra.mrb[32].mxu1 %v1075_v31  ;;  %2124 = vmatmul.mubr.bf16.gmra.mrb[52].mxu0 %v1075_v31  ;;  %v1076_v54 = vpack.c.bf16 %v1071_v51, %v1070_v53 }
 0x1b9   : > { %2091 = vmatprep.mubr.msk.bf16.mxu1 %vm2464_vm0, %v2463_v0  ;;  %2127 = vmatprep.mubr.msk.bf16.mxu0 %vm2464_vm0, %v2463_v0 }
 0x1ba   : > { %2144 = vmatpush3.bf16.msra.mxu1 %v2296_v52 }
 0x1bb   : > { %2145 = vmatprep.subr.bf16.mxu1 %v2463_v0 }
 0x1be   : > { %2146 = vmatpush3.bf16.msra.mxu1 %v2297_v12 }
 0x1c0   : > { %2092 = vmatmul.mubr.bf16.gmra.mrb[36].mxu1 %v1076_v54  ;;  %2128 = vmatmul.mubr.bf16.gmra.mrb[56].mxu0 %v1076_v54 }
 0x1c1   : > { %2147 = vmatprep.mubr.msk.bf16.mxu1 %vm2464_vm0, %v2463_v0 }
 0x1c8   : > { %2148 = vmatmul.mubr.bf16.vlgmr.msra.gmra.mrb[40].mxu1 %v2884_v49 }
 0x1c9   : > { %2151 = vmatprep.mubr.msk.bf16.mxu1 %vm2464_vm0, %v2463_v0 }
 0x1d0   : > { %2152 = vmatmul.mubr.bf16.gmra.mrb[44].mxu1 %v2901_v11 }
 0x1d1   : > { %2155 = vmatprep.mubr.msk.bf16.mxu1 %vm2464_vm0, %v2463_v0 }
 0x1d8   : > { %2156 = vmatmul.mubr.bf16.gmra.mrb[48].mxu1 %v1074_v37 }
 0x1d9   : > { %2159 = vmatprep.mubr.msk.bf16.mxu1 %vm2464_vm0, %v2463_v0 }
 0x1e0   : > { %2160 = vmatmul.mubr.bf16.gmra.mrb[52].mxu1 %v1075_v31 }
 0x1e1   : > { %2163 = vmatprep.mubr.msk.bf16.mxu1 %vm2464_vm0, %v2463_v0 }
 0x1e8   : > { %2164 = vmatmul.mubr.bf16.gmra.mrb[56].mxu1 %v1076_v54 }
 0x273   : > { %v1175_v55 = vpop.f32.mrb[20].mxu1  ;;  %v1313_v33 = vpop.f32.mrb[40].mxu0 }
 0x274   : > { %v2077_v49 = vpop.f32.mrb[21].mxu1  ;;  %v2113_v56 = vpop.f32.mrb[41].mxu0  ;;  %v1500_v60 = vrot.slane %v1313_v33, 1 }
 0x275   : > { %v1178_v57 = vpop.f32.mrb[22].mxu1  ;;  %v1316_v58 = vpop.f32.mrb[42].mxu0 }
 0x276   : > { %v1501_v63 = vrot.slane %v1316_v58, 1  ;;  %v2078_v1 = vpop.f32.mrb[23].mxu1  ;;  %v2114_v2 = vpop.f32.mrb[43].mxu0 }
 0x278   : > { %v1502_v3 = vsel %vm868_vm1, %v1500_v60, %v1501_v63 }
 0x279   : > { %v2950_v4 = vadd.f32 %v1502_v3, %v1175_v55 }
 0x27b   : > { %v1183_v6 = vpop.f32.mrb[24].mxu1  ;;  %v1321_v7 = vpop.f32.mrb[44].mxu0 }
 0x27c   : > { %v1503_v9 = vrot.slane %v1321_v7, 1  ;;  %v2081_v10 = vpop.f32.mrb[25].mxu1  ;;  %v2117_v0 = vpop.f32.mrb[45].mxu0  ;;  %v2982_v7 = vld [vmem:[%s3109_s7] ss:$0 sm:$0xff] }
 0x27d   : > { %v1186_v11 = vpop.f32.mrb[26].mxu1  ;;  %v1324_v13 = vpop.f32.mrb[46].mxu0  ;;  %v2988_v10 = vld [vmem:[%s3110_s8] ss:$0 sm:$0xff] }
 0x27e   : > { %v1504_v14 = vsel %vm868_vm1, %v1501_v63, %v1503_v9  ;;  %v1505_v45 = vrot.slane %v1324_v13, 1  ;;  %v2082_v15 = vpop.f32.mrb[27].mxu1  ;;  %v2118_v16 = vpop.f32.mrb[47].mxu0  ;;  %v1590_v13 = vld [vmem:[%s2697_s22] sm:$0xff] }
 0x27f   : > { %v2953_v18 = vadd.f32 %v1504_v14, %v1178_v57 }
 0x280   : > { %v1506_v20 = vsel %vm868_vm1, %v1503_v9, %v1505_v45 }
 0x281   : > { %v2956_v21 = vadd.f32 %v1506_v20, %v1183_v6 }
 0x283   : > { %v1191_v47 = vpop.f32.mrb[28].mxu1  ;;  %v1329_v22 = vpop.f32.mrb[48].mxu0 }
 0x284   : > { %v1507_v5 = vrot.slane %v1329_v22, 1  ;;  %v2085_v23 = vpop.f32.mrb[29].mxu1  ;;  %v2121_v24 = vpop.f32.mrb[49].mxu0 }
 0x285   : > { %v1194_v25 = vpop.f32.mrb[30].mxu1  ;;  %v1332_v26 = vpop.f32.mrb[50].mxu0  ;;  %v1614_v24 = vld [vmem:[%s2697_s22 + $0x10] sm:$0xff] }
 0x286   : > { %v1508_v27 = vsel %vm868_vm1, %v1505_v45, %v1507_v5  ;;  %v1509_v28 = vrot.slane %v1332_v26, 1  ;;  %v2086_v29 = vpop.f32.mrb[31].mxu1  ;;  %v2122_v30 = vpop.f32.mrb[51].mxu0 }
 0x287   : > { %v2959_v32 = vadd.f32 %v1508_v27, %v1186_v11 }
 0x288   : > { %v1510_v34 = vsel %vm868_vm1, %v1507_v5, %v1509_v28 }
 0x289   : > { %v2962_v35 = vadd.f32 %v1510_v34, %v1191_v47  ;;  %v1625_v34 = vrot.slane %v1614_v24, 4 }
 0x28b   : > { %v1199_v36 = vpop.f32.mrb[32].mxu1  ;;  %v1337_v17 = vpop.f32.mrb[52].mxu0 }
 0x28c   : > { %v1511_v37 = vrot.slane %v1337_v17, 1  ;;  %v2089_v38 = vpop.f32.mrb[33].mxu1  ;;  %v2125_v59 = vpop.f32.mrb[53].mxu0 }
 0x28d   : > { %v1202_v39 = vpop.f32.mrb[34].mxu1  ;;  %v1340_v40 = vpop.f32.mrb[54].mxu0 }
 0x28e   : > { %v1512_v61 = vsel %vm868_vm1, %v1509_v28, %v1511_v37  ;;  %v1513_v41 = vrot.slane %v1340_v40, 1  ;;  %v2090_v62 = vpop.f32.mrb[35].mxu1  ;;  %v2126_v19 = vpop.f32.mrb[55].mxu0  ;;  %v1591_v28 = vld [vmem:[%s2697_s22 + $0x8] sm:$0xff] }
 0x28f   : > { %v2965_v8 = vadd.f32 %v1512_v61, %v1194_v25 }
 0x290   : > { %v1514_v42 = vsel %vm868_vm1, %v1511_v37, %v1513_v41 }
 0x291   : > { %v2968_v43 = vadd.f32 %v1514_v42, %v1199_v36  ;;  %v1615_v36 = vld [vmem:[%s2697_s22 + $0x18] sm:$0xff] }
 0x292   : > { %v1626_v40 = vrot.slane %v1615_v36, 4 }
 0x293   : > { %v1207_v44 = vpop.f32.mrb[36].mxu1  ;;  %v1345_v46 = vpop.f32.mrb[56].mxu0 }
 0x294   : > { %v1515_v48 = vrot.slane %v1345_v46, 1  ;;  %v2093_v50 = vpop.f32.mrb[37].mxu1  ;;  %v2129_v51 = vpop.f32.mrb[57].mxu0 }
 0x295   : > { %v1210_v31 = vpop.f32.mrb[38].mxu1  ;;  %v1348_v52 = vpop.f32.mrb[58].mxu0  ;;  %v1627_v51 = vsel %vm1624_vm3, %v1625_v34, %v1626_v40 }
 0x296   : > { %v1516_v53 = vsel %vm868_vm1, %v1513_v41, %v1515_v48  ;;  %v1517_v54 = vrot.slane %v1348_v52, 1  ;;  %v2094_v12 = vpop.f32.mrb[39].mxu1  ;;  %v2130_v55 = vpop.f32.mrb[59].mxu0 }
 0x297   : > { %v2971_v33 = vadd.f32 %v1516_v53, %v1202_v39 }
 0x298   : > { %v1518_v49 = vsel %vm868_vm1, %v1515_v48, %v1517_v54  ;;  %v2974_v56 = vadd.f32 %v1517_v54, %v1210_v31 }
 0x299   : > { %v2976_v57 = vadd.f32 %v1518_v49, %v1207_v44 }
 0x29b   : > { %v1451_v58 = vpop.f32.mrb[40].mxu1 }
 0x29c   : > { %v2149_v60 = vpop.f32.mrb[41].mxu1  ;;  %v1549_v1 = vrot.slane %v1451_v58, 2 }
 0x29d   : > { %v1454_v63 = vpop.f32.mrb[42].mxu1 }
 0x29e   : > { %v1550_v2 = vrot.slane %v1454_v63, 2  ;;  %v2150_v3 = vpop.f32.mrb[43].mxu1 }
 0x2a0   : > { %v1551_v6 = vsel %vm918_vm2, %v1549_v1, %v1550_v2 }
 0x2a1   : > { %v1578_v9 = vadd.f32 %v1551_v6, %v2950_v4 }
 0x2a3   : > { %v1598_v0 = vmul.f32 %v2982_v7, %v1578_v9  ;;  %v1459_v11 = vpop.f32.mrb[44].mxu1 }
 0x2a4   : > { %v1552_v14 = vrot.slane %v1459_v11, 2  ;;  %v2153_v45 = vpop.f32.mrb[45].mxu1  ;;  %v1640_v11 = vld [vmem:[%s2697_s22 + $0x20] sm:$0xff] }
 0x2a5   : > { %v1606_v15 = vadd.f32 %v2988_v10, %v1598_v0  ;;  %v1462_v16 = vpop.f32.mrb[46].mxu1 }
 0x2a6   : > { %v1553_v20 = vsel %vm918_vm2, %v1550_v2, %v1552_v14  ;;  %v1554_v47 = vrot.slane %v1462_v16, 2  ;;  %v2154_v4 = vpop.f32.mrb[47].mxu1 }
 0x2a7   : > { %v1608_v22 = vadd.f32 %v1606_v15, %v1590_v13  ;;  %v1579_v5 = vadd.f32 %v1553_v20, %v2953_v18  ;;  %v1641_v15 = vld [vmem:[%s2697_s22 + $0x28] sm:$0xff]  ;;  %v1652_v4 = vld [vmem:[%s2697_s22 + $0x30] sm:$0xff] }
 0x2a8   : > { %v1555_v23 = vsel %vm918_vm2, %v1552_v14, %v1554_v47 }
 0x2a9   : > { %v1610_v25 = vmax.f32 %v1608_v22, 0.0  ;;  %v1599_v26 = vmul.f32 %v2982_v7, %v1579_v5  ;;  %v1580_v27 = vadd.f32 %v1555_v23, %v2956_v21  ;;  %v1653_v5 = vld [vmem:[%s2697_s22 + $0x38] sm:$0xff]  ;;  %s1691_s22 = sshll.u32 %s3002_s20, 4  ;;  %s3055_s22 = int_to_ptr.vmem [resolvable:$true] %s1691_s22 }
 0x2aa   : > { %s2384_s18 = scalar_lea.vmem %s3055_s22, 1024  ;;  %p2391_p9 = scmp.lt.s32.totalorder %s3055_s22, %s2389_s15 }
 0x2ab   : > { %1612 = vst [vmem:[%s3002_s20] sm:$0xff] %v1610_v25  ;;  %v1607_v29 = vadd.f32 %v2988_v10, %v1599_v26  ;;  %v1616_v30 = vmul.f32 %v2982_v7, %v1580_v27  ;;  %v1467_v18 = vpop.f32.mrb[48].mxu1  ;;  %p2385_p0 = scmp.ne.s32.totalorder %s3055_s22, %s2384_s18  ;;  %p2392_p12 = scmp.lt.s32.totalorder %s2390_s17, %s2384_s18 }
 0x2ac   : > { %v1556_v17 = vrot.slane %v1467_v18, 2  ;;  %v2157_v37 = vpop.f32.mrb[49].mxu1 }
 0x2ad   : > { %v1609_v38 = vadd.f32 %v1607_v29, %v1591_v28  ;;  %v1619_v59 = vadd.f32 %v2988_v10, %v1616_v30  ;;  %v1470_v21 = vpop.f32.mrb[50].mxu1  ;;  %v1662_v28 = vrot.slane %v1652_v4, 4  ;;  %p2386_p3 = pnand %p2385_p0, %p3127_p1  ;;  %p2393_p2 = por %p2392_p12, %p2391_p9 }
 0x2ae   : > { %v1557_v39 = vsel %vm918_vm2, %v1554_v47, %v1556_v17  ;;  %v1558_v61 = vrot.slane %v1470_v21, 2  ;;  %v2158_v41 = vpop.f32.mrb[51].mxu1 }
 0x2af   : > { %v1611_v62 = vmax.f32 %v1609_v38, 0.0  ;;  %v1631_v19 = vadd.f32 %v1625_v34, %v1619_v59  ;;  %v1581_v42 = vadd.f32 %v1557_v39, %v2959_v32  ;;  %v1663_v34 = vrot.slane %v1653_v5, 4  ;;  %p2387_p7 = pneg %p2386_p3 }
 0x2b0   : > { %v1559_v44 = vsel %vm918_vm2, %v1556_v17, %v1558_v61 }
 0x2b1   : > { %1613 = vst [vmem:[%s3002_s20 + $0x8] sm:$0xff] %v1611_v62  ;;  %v1634_v46 = vmax.f32 %v1631_v19, 0.0  ;;  %v1617_v48 = vmul.f32 %v2982_v7, %v1581_v42  ;;  %v1582_v50 = vadd.f32 %v1559_v44, %v2962_v35  ;;  %p2394_p13 = pnand %p2393_p2, %p2387_p7 }
 0x2b3   : > { %1637 = vst [vmem:[%s3002_s20 + $0xc] sm:$0xf0] %v1634_v46  ;;  %v1620_v31 = vadd.f32 %v2988_v10, %v1617_v48  ;;  %v1618_v52 = vmul.f32 %v2982_v7, %v1582_v50  ;;  %v1475_v53 = vpop.f32.mrb[52].mxu1 }
 0x2b4   : > { %v1560_v54 = vrot.slane %v1475_v53, 2  ;;  %v2161_v32 = vpop.f32.mrb[53].mxu1 }
 0x2b5   : > { %v1632_v12 = vadd.f32 %v1627_v51, %v1620_v31  ;;  %v1621_v55 = vadd.f32 %v2988_v10, %v1618_v52  ;;  %v1478_v49 = vpop.f32.mrb[54].mxu1 }
 0x2b6   : > { %v1561_v58 = vsel %vm918_vm2, %v1558_v61, %v1560_v54  ;;  %v1562_v35 = vrot.slane %v1478_v49, 2  ;;  %v2162_v60 = vpop.f32.mrb[55].mxu1 }
 0x2b7   : > { %v1635_v63 = vmax.f32 %v1632_v12, 0.0  ;;  %v1633_v1 = vadd.f32 %v1626_v40, %v1621_v55  ;;  %v1583_v2 = vadd.f32 %v1561_v58, %v2965_v8 }
 0x2b8   : > { %v1563_v3 = vsel %vm918_vm2, %v1560_v54, %v1562_v35 }
 0x2b9   : > { %1638 = vst [vmem:[%s3002_s20 + $0x14] sm:$0xff] %v1635_v63  ;;  %v1636_v6 = vmax.f32 %v1633_v1, 0.0  ;;  %v1642_v9 = vmul.f32 %v2982_v7, %v1583_v2  ;;  %v1584_v0 = vadd.f32 %v1563_v3, %v2968_v43 }
 0x2bb   : > { %1639 = vst [vmem:[%s3002_s20 + $0x1c] sm:$0xf] %v1636_v6  ;;  %v1644_v13 = vadd.f32 %v2988_v10, %v1642_v9  ;;  %v1643_v14 = vmul.f32 %v2982_v7, %v1584_v0  ;;  %v1483_v45 = vpop.f32.mrb[56].mxu1 }
 0x2bc   : > { %v1564_v16 = vrot.slane %v1483_v45, 2  ;;  %v2165_v8 = vpop.f32.mrb[57].mxu1 }
 0x2bd   : > { %v1646_v20 = vadd.f32 %v1644_v13, %v1640_v11  ;;  %v1645_v47 = vadd.f32 %v2988_v10, %v1643_v14  ;;  %v1486_v22 = vpop.f32.mrb[58].mxu1 }
 0x2be   : > { %v1565_v43 = vsel %vm918_vm2, %v1562_v35, %v1564_v16  ;;  %v1566_v23 = vrot.slane %v1486_v22, 2  ;;  %v2166_v24 = vpop.f32.mrb[59].mxu1 }
 0x2bf   : > { %v1648_v25 = vmax.f32 %v1646_v20, 0.0  ;;  %v1647_v26 = vadd.f32 %v1645_v47, %v1641_v15  ;;  %v1585_v27 = vadd.f32 %v1565_v43, %v2971_v33 }
 0x2c0   : > { %v1567_v29 = vsel %vm918_vm2, %v1564_v16, %v1566_v23  ;;  %v1587_v30 = vadd.f32 %v1566_v23, %v2974_v56  ;;  %v1664_v56 = vsel %vm1624_vm3, %v1662_v28, %v1663_v34 }
 0x2c1   : > { %1650 = vst [vmem:[%s3002_s20 + $0x20] sm:$0xff] %v1648_v25  ;;  %v1649_v18 = vmax.f32 %v1647_v26, 0.0  ;;  %v1654_v36 = vmul.f32 %v2982_v7, %v1585_v27  ;;  %v1586_v17 = vadd.f32 %v1567_v29, %v2976_v57 }
 0x2c2   : > { %v1656_v37 = vmul.f32 %v2982_v7, %v1587_v30 }
 0x2c3   : > { %1651 = vst [vmem:[%s3002_s20 + $0x28] sm:$0xff] %v1649_v18  ;;  %v1657_v33 = vadd.f32 %v2988_v10, %v1654_v36  ;;  %v1655_v38 = vmul.f32 %v2982_v7, %v1586_v17 }
 0x2c4   : > { %v1659_v59 = vadd.f32 %v2988_v10, %v1656_v37 }
 0x2c5   : > { %v1668_v21 = vadd.f32 %v1662_v28, %v1657_v33  ;;  %v1658_v39 = vadd.f32 %v2988_v10, %v1655_v38 }
 0x2c6   : > { %v1670_v57 = vadd.f32 %v1663_v34, %v1659_v59 }
 0x2c7   : > { %v1671_v40 = vmax.f32 %v1668_v21, 0.0  ;;  %v1669_v61 = vadd.f32 %v1664_v56, %v1658_v39 }
 0x2c8   : > { %v1673_v41 = vmax.f32 %v1670_v57, 0.0 }
 0x2c9   : > { %1674 = vst [vmem:[%s3002_s20 + $0x2c] sm:$0xf0] %v1671_v40  ;;  %v1672_v7 = vmax.f32 %v1669_v61, 0.0 }
 0x2ca   : > { %1676 = vst [vmem:[%s3002_s20 + $0x3c] sm:$0xf] %v1673_v41 }
 0x2cb   : > { %1675 = vst [vmem:[%s3002_s20 + $0x34] sm:$0xff] %v1672_v7 }
 0x2cc   : > { %2397 = shalt.err (!%p2394_p13)
}
 0x2cd   : > { %s2398_s14 = scalar_lea.hbm %s3053_s25, 1024  ;;  %s2402_s28 = scalar_lea.hbm %s3111_s9, 2048 }
 0x2ce   : > { %p2399_p6 = scmp.ne.s32.totalorder %s3053_s25, %s2398_s14  ;;  %p2403_p5 = scmp.lt.u32.totalorder %s3053_s25, %s3111_s9 }
 0x2cf   : > { %p2404_p8 = scmp.lt.u32.totalorder %s2402_s28, %s2398_s14  ;;  %p2406_p0 = scmp.lt.u32.totalorder %s2398_s14, %s3053_s25 }
 0x2d0   : > { %p2400_p10 = pnand %p2399_p6, %p3127_p1 }
 0x2d1   : > { %p2405_p11 = por %p2404_p8, %p2403_p5 }
 0x2d2   : > { %p2401_p4 = pneg %p2400_p10 }
 0x2d3   : > { %p2407_p3 = por %p2406_p0, %p2405_p11 }
 0x2d5   : > { %p2408_p7 = pnand %p2407_p3, %p2401_p4 }
 0x2d7   : > { %2411 = shalt.err (!%p2408_p7)
}
 0x2d8   : > { %s2467_s18 = smov 128   ;;  %s2468_s29 = smov 8  }
 0x2d9   : > { %2177 = dma.vmem_to_hbm [thread:$0]  (%p3127_p1), %s3055_s22, 1024, %s3053_s25, %s1678_s13, %s2467_s18, %s2467_s18, %s2468_s29  }
 0x2da PF: > { %s3128_s15 = sld [smem:[#allocation12_spill]]  ;;  %s1706_s17 = sand.u32 1, %s2442_s30  }
 0x2db   : > { %p3130_p12 = scmp.ge.s32.totalorder %s2454_s12, 2  ;;  %s1707_s14 = scalar_lea.sflag [#allocation4], %s1706_s17 }
 0x2e0   : > { %p3129_p9 = scmp.ne.s32.totalorder %s3128_s15, 0 }
 0x2e2   : > { %p2191_p2 = pnand %p3130_p12, %p3129_p9 }
 0x2e4   : > { %2437 = dma.done.wait (!%p2191_p2), %s1707_s14, 1024  }
 0x2e5   : > { %2439 = vsyncadd (!%p2191_p2), %s1707_s14, 4294966272  ;;  %p23_p13 = scmp.ge.s32.totalorder %s2629_s24, 4   ;;  %s3131_s30 = smov %s2446_s10 }
 0x2e6   : > { %s3132_s10 = smov %s2450_s11  ;;  %s3133_s11 = smov %s2645_s27 }
 0x2e7   : > { %s3134_s12 = smov %s2629_s24  ;;  %25 = sbr.rel (!%p23_p13) target bundleno = 6 (0x6), region = 116 }
 0x2ee   :  { %1712 = vsyncpa [#allocation3], 1 }
 0x2ef   :  { %1714 = vsyncpa [#allocation3 + $0x1], 1 }
 0x2f0   :  { %1715 = vsyncpa [#allocation6], 1 }
 0x2f1   :  { %1716 = vsyncpa [#allocation4], 1 }
 0x2f2   :  { %1718 = vsyncpa [#allocation4 + $0x1], 1 }

</bundles_post_ra>
